<compile_context>
chip_gen: v5e
topology: v5e:2x2
jax: 0.10.0
libtpu: 0.0.40
codegen_flags: <defaults>
</compile_context>

<pallas_src>
import functools

import jax
import jax.numpy as jnp
from jax.experimental import pallas as pl
from jax.experimental.pallas import tpu as pltpu

_LANE = 128
_GATE_ORDER = (0, 1, 3, 2)   # PyTorch rows are [i, f, g, o] -> pack as [i, f, o, g]


def _lstm_bidir_fc_kernel(x_ref,      # (T*B, E)   time-major rows (passed once)
                          w_ref,      # (E, 2G)    [fwd-slot cols | bwd-slot cols], G = 8H
                          b_ref,      # (1, 2G)    packed b_ih + b_hh (fwd half / bwd half)
                          whh_ref,    # (2H, G)    block-diagonal hidden->gate weights
                          fcw_ref,    # (2H, Opad) fc weight, transposed + lane-padded
                          fcb_ref,    # (1, Opad)  fc bias, lane-padded
                          out_ref,    # (B, Opad)
                          gx_ref):    # VMEM scratch (T*B, 2G) f32
    B = out_ref.shape[0]
    TB = x_ref.shape[0]
    T = TB // B
    H2 = whh_ref.shape[0]      # 2H : [fwd | bwd] hidden width
    G = whh_ref.shape[1]       # 8H : gate width, blocks [i|f|o|g] each 2H wide
    SIG = 3 * H2               # contiguous sigmoid slab [i|f|o]

    # ---- Hoisted input projection: one MXU GEMM for all T steps and BOTH
    #      directions (fwd pre-acts in cols [:G], bwd pre-acts in cols [G:]),
    #      biases folded in once.  Written to VMEM scratch so only ~2 gx
    #      vregs are live per step of the unrolled recurrence.
    gx_ref[...] = (jnp.dot(x_ref[...], w_ref[...],
                           preferred_element_type=jnp.float32) + b_ref[...])

    whh = whh_ref[...]                                       # (2H, 8H), loaded once
    h = jnp.zeros((B, H2), jnp.float32)                      # [h_fwd | h_bwd]
    c = jnp.zeros((B, H2), jnp.float32)

    # ---- Fused fwd/bwd recurrence, fully unrolled (T static): one
    #      block-diagonal matmul per step; gating math shared by both
    #      directions on the 2H-wide combined state.
    for t in range(T):                                       # compile-time unroll
        rf = t * B                                           # fwd consumes x[t]
        rb = (T - 1 - t) * B                                 # bwd consumes x[T-1-t]
        gates = (gx_ref[rf:rf + B, :G]
                 + gx_ref[rb:rb + B, G:]
                 + jnp.dot(h, whh, preferred_element_type=jnp.float32))  # (B, 8H)
        sig = jax.nn.sigmoid(gates[:, :SIG])                 # one EUP slab: [i | f | o]
        i_g = sig[:, 0:H2]
        f_g = sig[:, H2:2 * H2]
        o_g = sig[:, 2 * H2:SIG]
        g_g = jnp.tanh(gates[:, SIG:])                       # g gate
        c = f_g * c + i_g * g_g
        h = o_g * jnp.tanh(c)

    # h == concat(hidden[0], hidden[-1], dim=1)  -> fc (lane-dense output)
    out_ref[...] = (jnp.dot(h, fcw_ref[...], preferred_element_type=jnp.float32)
                    + fcb_ref[...])


def pack_params(params):
    """One-time weight packing (hoisted out of the per-call forward path)."""
    H = params["whh_f"].shape[1]
    E = params["wih_f"].shape[1]
    O = params["fcw"].shape[0]
    H2, G = 2 * H, 8 * H
    O_pad = max(_LANE, ((O + _LANE - 1) // _LANE) * _LANE)

    f32 = jnp.float32
    zEH = jnp.zeros((E, H), f32)
    zHH = jnp.zeros((H, H), f32)
    zH = jnp.zeros((H,), f32)
    bf = (params["bih_f"] + params["bhh_f"]).astype(f32)
    bb = (params["bih_b"] + params["bhh_b"]).astype(f32)

    wf_cols, wb_cols, bf_cols, bb_cols, whh_cols = [], [], [], [], []
    for j in _GATE_ORDER:                      # pack gates as [i, f, o, g]
        sl = slice(j * H, (j + 1) * H)
        # columns of each 2H gate block: [fwd H | bwd H]
        wf_cols += [params["wih_f"][sl].T.astype(f32), zEH]   # fwd GEMM half
        wb_cols += [zEH, params["wih_b"][sl].T.astype(f32)]   # bwd GEMM half
        bf_cols += [bf[sl], zH]
        bb_cols += [zH, bb[sl]]
        whh_cols += [jnp.concatenate([params["whh_f"][sl].T.astype(f32), zHH], axis=0),
                     jnp.concatenate([zHH, params["whh_b"][sl].T.astype(f32)], axis=0)]

    w_all = jnp.concatenate(wf_cols + wb_cols, axis=1)             # (E, 2G)
    b_all = jnp.concatenate(bf_cols + bb_cols).reshape(1, 2 * G)   # (1, 2G)
    whh_p = jnp.concatenate(whh_cols, axis=1)                      # (2H, G)
    fcw_pad = jnp.zeros((H2, O_pad), f32).at[:, :O].set(params["fcw"].T.astype(f32))
    fcb_pad = jnp.zeros((1, O_pad), f32).at[0, :O].set(params["fcb"].astype(f32))
    return {"w_all": w_all, "b_all": b_all, "whh": whh_p,
            "fcw": fcw_pad, "fcb": fcb_pad}


@functools.partial(jax.jit, static_argnames=("out_dim",))
def lstm_net_forward(embedded, packed, *, out_dim):
    """embedded: (B, T, E) batch-first, matching the PyTorch module."""
    B0, T, E = embedded.shape
    H2, G = packed["whh"].shape
    O_pad = packed["fcw"].shape[1]

    # Keep B a multiple of 8 so per-step gx row slices stay sublane-aligned.
    B = ((B0 + 7) // 8) * 8
    x = embedded.astype(jnp.float32)
    if B != B0:
        x = jnp.pad(x, ((0, B - B0), (0, 0), (0, 0)))

    # Time-major rows; the SAME slab feeds both directions (no duplication).
    x_tm = jnp.transpose(x, (1, 0, 2)).reshape(T * B, E)

    flops = (2 * (T * B) * E * (2 * G)        # hoisted input projection
             + T * 2 * B * H2 * G             # per-step block-diag matmuls
             + 2 * B * H2 * O_pad)            # fc
    bytes_accessed = 4 * (T * B * E + E * 2 * G + 2 * G + H2 * G
                          + H2 * O_pad + O_pad + B * O_pad)

    out_padded = pl.pallas_call(
        _lstm_bidir_fc_kernel,
        out_shape=jax.ShapeDtypeStruct((B, O_pad), jnp.float32),
        in_specs=[pl.BlockSpec(memory_space=pltpu.MemorySpace.VMEM)] * 6,
        out_specs=pl.BlockSpec(memory_space=pltpu.MemorySpace.VMEM),
        scratch_shapes=[pltpu.VMEM((T * B, 2 * G), jnp.float32)],
        cost_estimate=pl.CostEstimate(
            flops=flops,
            transcendentals=5 * T * B * H2,
            bytes_accessed=bytes_accessed),
    )(x_tm, packed["w_all"], packed["b_all"], packed["whh"],
      packed["fcw"], packed["fcb"])

    return out_padded[:B0, :out_dim]


def init_params(key, embedding_dim, hidden_dim, output_dim):
    """Deterministic init mimicking PyTorch's U(-1/sqrt(H), 1/sqrt(H))."""
    H, E, O = hidden_dim, embedding_dim, output_dim
    k = 1.0 / jnp.sqrt(H)
    names_shapes = [
        ("wih_f", (4 * H, E)), ("whh_f", (4 * H, H)),
        ("bih_f", (4 * H,)),   ("bhh_f", (4 * H,)),
        ("wih_b", (4 * H, E)), ("whh_b", (4 * H, H)),
        ("bih_b", (4 * H,)),   ("bhh_b", (4 * H,)),
        ("fcw",   (O, 2 * H)), ("fcb",   (O,)),
    ]
    keys = jax.random.split(key, len(names_shapes))
    return {n: jax.random.uniform(kk, s, jnp.float32, -k, k)
            for kk, (n, s) in zip(keys, names_shapes)}


def _reference_forward(embedded, params):
    """Pure-JAX reference of the same forward pass (sanity check)."""
    B, T, E = embedded.shape
    H = params["whh_f"].shape[1]

    def cell(x_t, h, c, wih, whh, b):
        g = x_t @ wih.T + h @ whh.T + b
        i = jax.nn.sigmoid(g[:, 0 * H:1 * H])
        f = jax.nn.sigmoid(g[:, 1 * H:2 * H])
        gg = jnp.tanh(g[:, 2 * H:3 * H])
        o = jax.nn.sigmoid(g[:, 3 * H:4 * H])
        c = f * c + i * gg
        return o * jnp.tanh(c), c

    h = c = jnp.zeros((B, H), jnp.float32)
    for t in range(T):
        h, c = cell(embedded[:, t], h, c, params["wih_f"], params["whh_f"],
                    params["bih_f"] + params["bhh_f"])
    h_f = h
    h = c = jnp.zeros((B, H), jnp.float32)
    for t in range(T - 1, -1, -1):
        h, c = cell(embedded[:, t], h, c, params["wih_b"], params["whh_b"],
                    params["bih_b"] + params["bhh_b"])
    h_b = h
    hc = jnp.concatenate([h_f, h_b], axis=1)
    return hc @ params["fcw"].T + params["fcb"]


if __name__ == "__main__":
    # Module config: use_embeds=True, hidden_dim=32, output_dim=4,
    # n_layers=1, bidirectional=True, dropout=0.0 (inactive for 1 layer).
    B, T, E, H, O = 8, 8, 32, 32, 4

    key = jax.random.PRNGKey(0)
    k_x, k_p = jax.random.split(key)
    embedded = jax.random.normal(k_x, (B, T, E), jnp.float32)
    params = init_params(k_p, E, H, O)

    packed = jax.tree_util.tree_map(jax.block_until_ready, pack_params(params))

    out = lstm_net_forward(embedded, packed, out_dim=O)
    out = jax.block_until_ready(out)

    ref = _reference_forward(embedded, params)
    assert out.shape == (B, O)
    assert jnp.allclose(out, ref, atol=1e-3, rtol=1e-3), "mismatch vs reference"

    print("KERNEL_OK")
</pallas_src>

<mosaic_0001>
module attributes {stable_mosaic.version = 11 : i64} {
  func.func @_lstm_bidir_fc_kernel(%arg0: memref<64x32xf32, #tpu.memory_space<vmem>>, %arg1: memref<32x512xf32, #tpu.memory_space<vmem>>, %arg2: memref<1x512xf32, #tpu.memory_space<vmem>>, %arg3: memref<64x256xf32, #tpu.memory_space<vmem>>, %arg4: memref<64x128xf32, #tpu.memory_space<vmem>>, %arg5: memref<1x128xf32, #tpu.memory_space<vmem>>, %arg6: memref<8x128xf32, #tpu.memory_space<vmem>>, %arg7: memref<64x512xf32, #tpu.memory_space<vmem>>) attributes {dimension_semantics = [], scalar_prefetch = 0 : i64, scratch_operands = 1 : i64, tpu.core_type = #tpu.core_type<tc>} {
    %c0 = arith.constant 0 : index
    %c0_0 = arith.constant 0 : index
    %0 = vector.load %arg0[%c0, %c0_0] : memref<64x32xf32, #tpu.memory_space<vmem>>, vector<64x32xf32>
    %c0_1 = arith.constant 0 : index
    %c0_2 = arith.constant 0 : index
    %1 = vector.load %arg1[%c0_1, %c0_2] : memref<32x512xf32, #tpu.memory_space<vmem>>, vector<32x512xf32>
    %cst = arith.constant dense<0.000000e+00> : vector<64x512xf32>
    %2 = tpu.matmul %0, %1, %cst {dimension_numbers = #tpu.dot_dimension_numbers<[1], [0], [0], [1], [0, 0, 1, 1], [], []>} : vector<64x32xf32>, vector<32x512xf32>, vector<64x512xf32> -> vector<64x512xf32>
    %c0_3 = arith.constant 0 : index
    %c0_4 = arith.constant 0 : index
    %3 = vector.load %arg2[%c0_3, %c0_4] : memref<1x512xf32, #tpu.memory_space<vmem>>, vector<1x512xf32>
    %4 = vector.broadcast %3 : vector<1x512xf32> to vector<64x512xf32>
    %5 = arith.addf %2, %4 : vector<64x512xf32>
    %c0_5 = arith.constant 0 : index
    %c0_6 = arith.constant 0 : index
    %6 = vector.load %arg7[%c0_5, %c0_6] : memref<64x512xf32, #tpu.memory_space<vmem>>, vector<64x512xf32>
    tpu.vector_store %arg7[%c0_5, %c0_6], %5 {strides = array<i32>} : memref<64x512xf32, #tpu.memory_space<vmem>>, vector<64x512xf32>,
    %c0_7 = arith.constant 0 : index
    %c0_8 = arith.constant 0 : index
    %7 = vector.load %arg3[%c0_7, %c0_8] : memref<64x256xf32, #tpu.memory_space<vmem>>, vector<64x256xf32>
    %cst_9 = arith.constant 0.000000e+00 : f32
    %8 = vector.broadcast %cst_9 : f32 to vector<8x64xf32>
    %cst_10 = arith.constant 0.000000e+00 : f32
    %9 = vector.broadcast %cst_10 : f32 to vector<8x64xf32>
    %c0_11 = arith.constant 0 : index
    %c0_12 = arith.constant 0 : index
    %10 = vector.load %arg7[%c0_11, %c0_12] : memref<64x512xf32, #tpu.memory_space<vmem>>, vector<8x256xf32>
    %c56 = arith.constant 56 : index
    %c256 = arith.constant 256 : index
    %11 = vector.load %arg7[%c56, %c256] : memref<64x512xf32, #tpu.memory_space<vmem>>, vector<8x256xf32>
    %12 = arith.addf %10, %11 : vector<8x256xf32>
    %cst_13 = arith.constant dense<0.000000e+00> : vector<8x256xf32>
    %13 = tpu.matmul %8, %7, %cst_13 {dimension_numbers = #tpu.dot_dimension_numbers<[1], [0], [0], [1], [0, 0, 1, 1], [], []>} : vector<8x64xf32>, vector<64x256xf32>, vector<8x256xf32> -> vector<8x256xf32>
    %14 = arith.addf %12, %13 : vector<8x256xf32>
    %15 = vector.extract_strided_slice %14 {offsets = [0, 0], sizes = [8, 192], strides = [1, 1]} : vector<8x256xf32> to vector<8x192xf32>
    %16 = arith.negf %15 : vector<8x192xf32>
    %17 = math.exp %16 : vector<8x192xf32>
    %cst_14 = arith.constant 1.000000e+00 : f32
    %18 = vector.broadcast %cst_14 : f32 to vector<8x192xf32>
    %19 = arith.addf %18, %17 : vector<8x192xf32>
    %20 = arith.divf %18, %19 : vector<8x192xf32>
    %21 = vector.extract_strided_slice %20 {offsets = [0, 0], sizes = [8, 64], strides = [1, 1]} : vector<8x192xf32> to vector<8x64xf32>
    %22 = vector.extract_strided_slice %20 {offsets = [0, 64], sizes = [8, 64], strides = [1, 1]} : vector<8x192xf32> to vector<8x64xf32>
    %23 = vector.extract_strided_slice %20 {offsets = [0, 128], sizes = [8, 64], strides = [1, 1]} : vector<8x192xf32> to vector<8x64xf32>
    %24 = vector.extract_strided_slice %14 {offsets = [0, 192], sizes = [8, 64], strides = [1, 1]} : vector<8x256xf32> to vector<8x64xf32>
    %25 = math.tanh %24 : vector<8x64xf32>
    %26 = arith.mulf %22, %9 : vector<8x64xf32>
    %27 = arith.mulf %21, %25 : vector<8x64xf32>
    %28 = arith.addf %26, %27 : vector<8x64xf32>
    %29 = math.tanh %28 : vector<8x64xf32>
    %30 = arith.mulf %23, %29 : vector<8x64xf32>
    %c8 = arith.constant 8 : index
    %c0_15 = arith.constant 0 : index
    %31 = vector.load %arg7[%c8, %c0_15] : memref<64x512xf32, #tpu.memory_space<vmem>>, vector<8x256xf32>
    %c48 = arith.constant 48 : index
    %c256_16 = arith.constant 256 : index
    %32 = vector.load %arg7[%c48, %c256_16] : memref<64x512xf32, #tpu.memory_space<vmem>>, vector<8x256xf32>
    %33 = arith.addf %31, %32 : vector<8x256xf32>
    %cst_17 = arith.constant dense<0.000000e+00> : vector<8x256xf32>
    %34 = tpu.matmul %30, %7, %cst_17 {dimension_numbers = #tpu.dot_dimension_numbers<[1], [0], [0], [1], [0, 0, 1, 1], [], []>} : vector<8x64xf32>, vector<64x256xf32>, vector<8x256xf32> -> vector<8x256xf32>
    %35 = arith.addf %33, %34 : vector<8x256xf32>
    %36 = vector.extract_strided_slice %35 {offsets = [0, 0], sizes = [8, 192], strides = [1, 1]} : vector<8x256xf32> to vector<8x192xf32>
    %37 = arith.negf %36 : vector<8x192xf32>
    %38 = math.exp %37 : vector<8x192xf32>
    %cst_18 = arith.constant 1.000000e+00 : f32
    %39 = vector.broadcast %cst_18 : f32 to vector<8x192xf32>
    %40 = arith.addf %39, %38 : vector<8x192xf32>
    %41 = arith.divf %39, %40 : vector<8x192xf32>
    %42 = vector.extract_strided_slice %41 {offsets = [0, 0], sizes = [8, 64], strides = [1, 1]} : vector<8x192xf32> to vector<8x64xf32>
    %43 = vector.extract_strided_slice %41 {offsets = [0, 64], sizes = [8, 64], strides = [1, 1]} : vector<8x192xf32> to vector<8x64xf32>
    %44 = vector.extract_strided_slice %41 {offsets = [0, 128], sizes = [8, 64], strides = [1, 1]} : vector<8x192xf32> to vector<8x64xf32>
    %45 = vector.extract_strided_slice %35 {offsets = [0, 192], sizes = [8, 64], strides = [1, 1]} : vector<8x256xf32> to vector<8x64xf32>
    %46 = math.tanh %45 : vector<8x64xf32>
    %47 = arith.mulf %43, %28 : vector<8x64xf32>
    %48 = arith.mulf %42, %46 : vector<8x64xf32>
    %49 = arith.addf %47, %48 : vector<8x64xf32>
    %50 = math.tanh %49 : vector<8x64xf32>
    %51 = arith.mulf %44, %50 : vector<8x64xf32>
    %c16 = arith.constant 16 : index
    %c0_19 = arith.constant 0 : index
    %52 = vector.load %arg7[%c16, %c0_19] : memref<64x512xf32, #tpu.memory_space<vmem>>, vector<8x256xf32>
    %c40 = arith.constant 40 : index
    %c256_20 = arith.constant 256 : index
    %53 = vector.load %arg7[%c40, %c256_20] : memref<64x512xf32, #tpu.memory_space<vmem>>, vector<8x256xf32>
    %54 = arith.addf %52, %53 : vector<8x256xf32>
    %cst_21 = arith.constant dense<0.000000e+00> : vector<8x256xf32>
    %55 = tpu.matmul %51, %7, %cst_21 {dimension_numbers = #tpu.dot_dimension_numbers<[1], [0], [0], [1], [0, 0, 1, 1], [], []>} : vector<8x64xf32>, vector<64x256xf32>, vector<8x256xf32> -> vector<8x256xf32>
    %56 = arith.addf %54, %55 : vector<8x256xf32>
    %57 = vector.extract_strided_slice %56 {offsets = [0, 0], sizes = [8, 192], strides = [1, 1]} : vector<8x256xf32> to vector<8x192xf32>
    %58 = arith.negf %57 : vector<8x192xf32>
    %59 = math.exp %58 : vector<8x192xf32>
    %cst_22 = arith.constant 1.000000e+00 : f32
    %60 = vector.broadcast %cst_22 : f32 to vector<8x192xf32>
    %61 = arith.addf %60, %59 : vector<8x192xf32>
    %62 = arith.divf %60, %61 : vector<8x192xf32>
    %63 = vector.extract_strided_slice %62 {offsets = [0, 0], sizes = [8, 64], strides = [1, 1]} : vector<8x192xf32> to vector<8x64xf32>
    %64 = vector.extract_strided_slice %62 {offsets = [0, 64], sizes = [8, 64], strides = [1, 1]} : vector<8x192xf32> to vector<8x64xf32>
    %65 = vector.extract_strided_slice %62 {offsets = [0, 128], sizes = [8, 64], strides = [1, 1]} : vector<8x192xf32> to vector<8x64xf32>
    %66 = vector.extract_strided_slice %56 {offsets = [0, 192], sizes = [8, 64], strides = [1, 1]} : vector<8x256xf32> to vector<8x64xf32>
    %67 = math.tanh %66 : vector<8x64xf32>
    %68 = arith.mulf %64, %49 : vector<8x64xf32>
    %69 = arith.mulf %63, %67 : vector<8x64xf32>
    %70 = arith.addf %68, %69 : vector<8x64xf32>
    %71 = math.tanh %70 : vector<8x64xf32>
    %72 = arith.mulf %65, %71 : vector<8x64xf32>
    %c24 = arith.constant 24 : index
    %c0_23 = arith.constant 0 : index
    %73 = vector.load %arg7[%c24, %c0_23] : memref<64x512xf32, #tpu.memory_space<vmem>>, vector<8x256xf32>
    %c32 = arith.constant 32 : index
    %c256_24 = arith.constant 256 : index
    %74 = vector.load %arg7[%c32, %c256_24] : memref<64x512xf32, #tpu.memory_space<vmem>>, vector<8x256xf32>
    %75 = arith.addf %73, %74 : vector<8x256xf32>
    %cst_25 = arith.constant dense<0.000000e+00> : vector<8x256xf32>
    %76 = tpu.matmul %72, %7, %cst_25 {dimension_numbers = #tpu.dot_dimension_numbers<[1], [0], [0], [1], [0, 0, 1, 1], [], []>} : vector<8x64xf32>, vector<64x256xf32>, vector<8x256xf32> -> vector<8x256xf32>
    %77 = arith.addf %75, %76 : vector<8x256xf32>
    %78 = vector.extract_strided_slice %77 {offsets = [0, 0], sizes = [8, 192], strides = [1, 1]} : vector<8x256xf32> to vector<8x192xf32>
    %79 = arith.negf %78 : vector<8x192xf32>
    %80 = math.exp %79 : vector<8x192xf32>
    %cst_26 = arith.constant 1.000000e+00 : f32
    %81 = vector.broadcast %cst_26 : f32 to vector<8x192xf32>
    %82 = arith.addf %81, %80 : vector<8x192xf32>
    %83 = arith.divf %81, %82 : vector<8x192xf32>
    %84 = vector.extract_strided_slice %83 {offsets = [0, 0], sizes = [8, 64], strides = [1, 1]} : vector<8x192xf32> to vector<8x64xf32>
    %85 = vector.extract_strided_slice %83 {offsets = [0, 64], sizes = [8, 64], strides = [1, 1]} : vector<8x192xf32> to vector<8x64xf32>
    %86 = vector.extract_strided_slice %83 {offsets = [0, 128], sizes = [8, 64], strides = [1, 1]} : vector<8x192xf32> to vector<8x64xf32>
    %87 = vector.extract_strided_slice %77 {offsets = [0, 192], sizes = [8, 64], strides = [1, 1]} : vector<8x256xf32> to vector<8x64xf32>
    %88 = math.tanh %87 : vector<8x64xf32>
    %89 = arith.mulf %85, %70 : vector<8x64xf32>
    %90 = arith.mulf %84, %88 : vector<8x64xf32>
    %91 = arith.addf %89, %90 : vector<8x64xf32>
    %92 = math.tanh %91 : vector<8x64xf32>
    %93 = arith.mulf %86, %92 : vector<8x64xf32>
    %c32_27 = arith.constant 32 : index
    %c0_28 = arith.constant 0 : index
    %94 = vector.load %arg7[%c32_27, %c0_28] : memref<64x512xf32, #tpu.memory_space<vmem>>, vector<8x256xf32>
    %c24_29 = arith.constant 24 : index
    %c256_30 = arith.constant 256 : index
    %95 = vector.load %arg7[%c24_29, %c256_30] : memref<64x512xf32, #tpu.memory_space<vmem>>, vector<8x256xf32>
    %96 = arith.addf %94, %95 : vector<8x256xf32>
    %cst_31 = arith.constant dense<0.000000e+00> : vector<8x256xf32>
    %97 = tpu.matmul %93, %7, %cst_31 {dimension_numbers = #tpu.dot_dimension_numbers<[1], [0], [0], [1], [0, 0, 1, 1], [], []>} : vector<8x64xf32>, vector<64x256xf32>, vector<8x256xf32> -> vector<8x256xf32>
    %98 = arith.addf %96, %97 : vector<8x256xf32>
    %99 = vector.extract_strided_slice %98 {offsets = [0, 0], sizes = [8, 192], strides = [1, 1]} : vector<8x256xf32> to vector<8x192xf32>
    %100 = arith.negf %99 : vector<8x192xf32>
    %101 = math.exp %100 : vector<8x192xf32>
    %cst_32 = arith.constant 1.000000e+00 : f32
    %102 = vector.broadcast %cst_32 : f32 to vector<8x192xf32>
    %103 = arith.addf %102, %101 : vector<8x192xf32>
    %104 = arith.divf %102, %103 : vector<8x192xf32>
    %105 = vector.extract_strided_slice %104 {offsets = [0, 0], sizes = [8, 64], strides = [1, 1]} : vector<8x192xf32> to vector<8x64xf32>
    %106 = vector.extract_strided_slice %104 {offsets = [0, 64], sizes = [8, 64], strides = [1, 1]} : vector<8x192xf32> to vector<8x64xf32>
    %107 = vector.extract_strided_slice %104 {offsets = [0, 128], sizes = [8, 64], strides = [1, 1]} : vector<8x192xf32> to vector<8x64xf32>
    %108 = vector.extract_strided_slice %98 {offsets = [0, 192], sizes = [8, 64], strides = [1, 1]} : vector<8x256xf32> to vector<8x64xf32>
    %109 = math.tanh %108 : vector<8x64xf32>
    %110 = arith.mulf %106, %91 : vector<8x64xf32>
    %111 = arith.mulf %105, %109 : vector<8x64xf32>
    %112 = arith.addf %110, %111 : vector<8x64xf32>
    %113 = math.tanh %112 : vector<8x64xf32>
    %114 = arith.mulf %107, %113 : vector<8x64xf32>
    %c40_33 = arith.constant 40 : index
    %c0_34 = arith.constant 0 : index
    %115 = vector.load %arg7[%c40_33, %c0_34] : memref<64x512xf32, #tpu.memory_space<vmem>>, vector<8x256xf32>
    %c16_35 = arith.constant 16 : index
    %c256_36 = arith.constant 256 : index
    %116 = vector.load %arg7[%c16_35, %c256_36] : memref<64x512xf32, #tpu.memory_space<vmem>>, vector<8x256xf32>
    %117 = arith.addf %115, %116 : vector<8x256xf32>
    %cst_37 = arith.constant dense<0.000000e+00> : vector<8x256xf32>
    %118 = tpu.matmul %114, %7, %cst_37 {dimension_numbers = #tpu.dot_dimension_numbers<[1], [0], [0], [1], [0, 0, 1, 1], [], []>} : vector<8x64xf32>, vector<64x256xf32>, vector<8x256xf32> -> vector<8x256xf32>
    %119 = arith.addf %117, %118 : vector<8x256xf32>
    %120 = vector.extract_strided_slice %119 {offsets = [0, 0], sizes = [8, 192], strides = [1, 1]} : vector<8x256xf32> to vector<8x192xf32>
    %121 = arith.negf %120 : vector<8x192xf32>
    %122 = math.exp %121 : vector<8x192xf32>
    %cst_38 = arith.constant 1.000000e+00 : f32
    %123 = vector.broadcast %cst_38 : f32 to vector<8x192xf32>
    %124 = arith.addf %123, %122 : vector<8x192xf32>
    %125 = arith.divf %123, %124 : vector<8x192xf32>
    %126 = vector.extract_strided_slice %125 {offsets = [0, 0], sizes = [8, 64], strides = [1, 1]} : vector<8x192xf32> to vector<8x64xf32>
    %127 = vector.extract_strided_slice %125 {offsets = [0, 64], sizes = [8, 64], strides = [1, 1]} : vector<8x192xf32> to vector<8x64xf32>
    %128 = vector.extract_strided_slice %125 {offsets = [0, 128], sizes = [8, 64], strides = [1, 1]} : vector<8x192xf32> to vector<8x64xf32>
    %129 = vector.extract_strided_slice %119 {offsets = [0, 192], sizes = [8, 64], strides = [1, 1]} : vector<8x256xf32> to vector<8x64xf32>
    %130 = math.tanh %129 : vector<8x64xf32>
    %131 = arith.mulf %127, %112 : vector<8x64xf32>
    %132 = arith.mulf %126, %130 : vector<8x64xf32>
    %133 = arith.addf %131, %132 : vector<8x64xf32>
    %134 = math.tanh %133 : vector<8x64xf32>
    %135 = arith.mulf %128, %134 : vector<8x64xf32>
    %c48_39 = arith.constant 48 : index
    %c0_40 = arith.constant 0 : index
    %136 = vector.load %arg7[%c48_39, %c0_40] : memref<64x512xf32, #tpu.memory_space<vmem>>, vector<8x256xf32>
    %c8_41 = arith.constant 8 : index
    %c256_42 = arith.constant 256 : index
    %137 = vector.load %arg7[%c8_41, %c256_42] : memref<64x512xf32, #tpu.memory_space<vmem>>, vector<8x256xf32>
    %138 = arith.addf %136, %137 : vector<8x256xf32>
    %cst_43 = arith.constant dense<0.000000e+00> : vector<8x256xf32>
    %139 = tpu.matmul %135, %7, %cst_43 {dimension_numbers = #tpu.dot_dimension_numbers<[1], [0], [0], [1], [0, 0, 1, 1], [], []>} : vector<8x64xf32>, vector<64x256xf32>, vector<8x256xf32> -> vector<8x256xf32>
    %140 = arith.addf %138, %139 : vector<8x256xf32>
    %141 = vector.extract_strided_slice %140 {offsets = [0, 0], sizes = [8, 192], strides = [1, 1]} : vector<8x256xf32> to vector<8x192xf32>
    %142 = arith.negf %141 : vector<8x192xf32>
    %143 = math.exp %142 : vector<8x192xf32>
    %cst_44 = arith.constant 1.000000e+00 : f32
    %144 = vector.broadcast %cst_44 : f32 to vector<8x192xf32>
    %145 = arith.addf %144, %143 : vector<8x192xf32>
    %146 = arith.divf %144, %145 : vector<8x192xf32>
    %147 = vector.extract_strided_slice %146 {offsets = [0, 0], sizes = [8, 64], strides = [1, 1]} : vector<8x192xf32> to vector<8x64xf32>
    %148 = vector.extract_strided_slice %146 {offsets = [0, 64], sizes = [8, 64], strides = [1, 1]} : vector<8x192xf32> to vector<8x64xf32>
    %149 = vector.extract_strided_slice %146 {offsets = [0, 128], sizes = [8, 64], strides = [1, 1]} : vector<8x192xf32> to vector<8x64xf32>
    %150 = vector.extract_strided_slice %140 {offsets = [0, 192], sizes = [8, 64], strides = [1, 1]} : vector<8x256xf32> to vector<8x64xf32>
    %151 = math.tanh %150 : vector<8x64xf32>
    %152 = arith.mulf %148, %133 : vector<8x64xf32>
    %153 = arith.mulf %147, %151 : vector<8x64xf32>
    %154 = arith.addf %152, %153 : vector<8x64xf32>
    %155 = math.tanh %154 : vector<8x64xf32>
    %156 = arith.mulf %149, %155 : vector<8x64xf32>
    %c56_45 = arith.constant 56 : index
    %c0_46 = arith.constant 0 : index
    %157 = vector.load %arg7[%c56_45, %c0_46] : memref<64x512xf32, #tpu.memory_space<vmem>>, vector<8x256xf32>
    %c0_47 = arith.constant 0 : index
    %c256_48 = arith.constant 256 : index
    %158 = vector.load %arg7[%c0_47, %c256_48] : memref<64x512xf32, #tpu.memory_space<vmem>>, vector<8x256xf32>
    %159 = arith.addf %157, %158 : vector<8x256xf32>
    %cst_49 = arith.constant dense<0.000000e+00> : vector<8x256xf32>
    %160 = tpu.matmul %156, %7, %cst_49 {dimension_numbers = #tpu.dot_dimension_numbers<[1], [0], [0], [1], [0, 0, 1, 1], [], []>} : vector<8x64xf32>, vector<64x256xf32>, vector<8x256xf32> -> vector<8x256xf32>
    %161 = arith.addf %159, %160 : vector<8x256xf32>
    %162 = vector.extract_strided_slice %161 {offsets = [0, 0], sizes = [8, 192], strides = [1, 1]} : vector<8x256xf32> to vector<8x192xf32>
    %163 = arith.negf %162 : vector<8x192xf32>
    %164 = math.exp %163 : vector<8x192xf32>
    %cst_50 = arith.constant 1.000000e+00 : f32
    %165 = vector.broadcast %cst_50 : f32 to vector<8x192xf32>
    %166 = arith.addf %165, %164 : vector<8x192xf32>
    %167 = arith.divf %165, %166 : vector<8x192xf32>
    %168 = vector.extract_strided_slice %167 {offsets = [0, 0], sizes = [8, 64], strides = [1, 1]} : vector<8x192xf32> to vector<8x64xf32>
    %169 = vector.extract_strided_slice %167 {offsets = [0, 64], sizes = [8, 64], strides = [1, 1]} : vector<8x192xf32> to vector<8x64xf32>
    %170 = vector.extract_strided_slice %167 {offsets = [0, 128], sizes = [8, 64], strides = [1, 1]} : vector<8x192xf32> to vector<8x64xf32>
    %171 = vector.extract_strided_slice %161 {offsets = [0, 192], sizes = [8, 64], strides = [1, 1]} : vector<8x256xf32> to vector<8x64xf32>
    %172 = math.tanh %171 : vector<8x64xf32>
    %173 = arith.mulf %169, %154 : vector<8x64xf32>
    %174 = arith.mulf %168, %172 : vector<8x64xf32>
    %175 = arith.addf %173, %174 : vector<8x64xf32>
    %176 = math.tanh %175 : vector<8x64xf32>
    %177 = arith.mulf %170, %176 : vector<8x64xf32>
    %c0_51 = arith.constant 0 : index
    %c0_52 = arith.constant 0 : index
    %178 = vector.load %arg4[%c0_51, %c0_52] : memref<64x128xf32, #tpu.memory_space<vmem>>, vector<64x128xf32>
    %cst_53 = arith.constant dense<0.000000e+00> : vector<8x128xf32>
    %179 = tpu.matmul %177, %178, %cst_53 {dimension_numbers = #tpu.dot_dimension_numbers<[1], [0], [0], [1], [0, 0, 1, 1], [], []>} : vector<8x64xf32>, vector<64x128xf32>, vector<8x128xf32> -> vector<8x128xf32>
    %c0_54 = arith.constant 0 : index
    %c0_55 = arith.constant 0 : index
    %180 = vector.load %arg5[%c0_54, %c0_55] : memref<1x128xf32, #tpu.memory_space<vmem>>, vector<1x128xf32>
    %181 = vector.broadcast %180 : vector<1x128xf32> to vector<8x128xf32>
    %182 = arith.addf %179, %181 : vector<8x128xf32>
    %c0_56 = arith.constant 0 : index
    %c0_57 = arith.constant 0 : index
    %183 = vector.load %arg6[%c0_56, %c0_57] : memref<8x128xf32, #tpu.memory_space<vmem>>, vector<8x128xf32>
    tpu.vector_store %arg6[%c0_56, %c0_57], %182 {strides = array<i32>} : memref<8x128xf32, #tpu.memory_space<vmem>>, vector<8x128xf32>,
    return
  }
}

</mosaic_0001>

<bundles_post_ra>
// kernel: lstm_net_forward.1
= control target key start
LH: loop header
LB: loop body
LE: loop exit
PB: predicated region body
PF: predicated region fallthrough
CT: control target
= control target key end

     0   :  { %11 = vsyncpa [#allocation4], 0  ;;  %s1949_s0 = inlined_call_operand.vmem [shape: f32[64,32], index: 0, kind: input, shape index: {}]   ;;  %s1950_s1 = inlined_call_operand.vmem [shape: f32[32,512], index: 1, kind: input, shape index: {}]   ;;  %s1951_s2 = inlined_call_operand.vmem [shape: f32[1,512], index: 2, kind: input, shape index: {}]   ;;  %s1952_s3 = inlined_call_operand.hbm [shape: f32[64,256], index: 3, kind: input, shape index: {}]   ;;  %s1953_s4 = inlined_call_operand.hbm [shape: f32[64,128], index: 4, kind: input, shape index: {}]   ;;  %s1954_s5 = inlined_call_operand.hbm [shape: f32[1,128], index: 5, kind: input, shape index: {}]   ;;  %s1955_s6 = inlined_call_operand.vmem [shape: f32[8,128], index: 6, kind: output, shape index: {}]  }
   0x1   :  { %12 = vsyncpa [#allocation6], 0  ;;  %s36_s23 = sshll.u32 %s1953_s4, 4  ;;  %s1487_s24 = smov [#allocation5]   ;;  %s37_s23 = int_to_ptr.hbm [resolvable:$true] %s36_s23 }
   0x2   :  { %s38_s25 = sshll.u32 %s1487_s24, 4  ;;  %s23_s28 = sshll.u32 %s1952_s3, 4  ;;  %s39_s25 = int_to_ptr.vmem [resolvable:$true] %s38_s25  ;;  %s24_s28 = int_to_ptr.hbm [resolvable:$true] %s23_s28 }
   0x3   :  { %s1488_s29 = smov 128   ;;  %s1489_s30 = smov 8  }
   0x4   :  { %44 = dma.hbm_to_vmem [thread:$0]  %s37_s23, 1024, %s39_s25, [#allocation6], %s1488_s29, %s1488_s29, %s1489_s30  }
   0x5   :  { %s1490_s7 = smov [#allocation3]   ;;  %s1491_s9 = smov 256  }
   0x6   :  { %s25_s8 = sshll.u32 %s1490_s7, 4  ;;  %s1492_s10 = smov 16   ;;  %s26_s8 = int_to_ptr.vmem [resolvable:$true] %s25_s8 }
   0x7   :  { %31 = dma.hbm_to_vmem [thread:$0]  %s24_s28, 2048, %s26_s8, [#allocation4], %s1491_s9, %s1491_s9, %s1492_s10  }
   0x8   :  { %s50_s12 = sshll.u32 %s1954_s5, 4  ;;  %s1493_s13 = smov [#allocation7]   ;;  %s51_s12 = int_to_ptr.hbm [resolvable:$true] %s50_s12 }
   0x9   :  { %s52_s14 = sshll.u32 %s1493_s13, 4  ;;  %s53_s14 = int_to_ptr.vmem [resolvable:$true] %s52_s14 }
   0xa   :  { %55 = dma.hbm_to_vmem [thread:$0]  %s51_s12, 16, %s53_s14, [#allocation6]  }
   0xb   :  { %1483 = dma.done.wait [#allocation4], 2048  }
   0xc   :  { %1484 = vsyncadd [#allocation4], 4294965248 }
   0xd   :  { %1485 = dma.done.wait [#allocation6], 1040  }
   0xe   :  { %1486 = vsyncadd [#allocation6], 4294966256  ;;  %v88_v0 = vld [vmem:[%s1950_s1 + $0x60] sm:$0xff]  ;;  %v90_v1 = vld [vmem:[%s1950_s1 + $0x70] sm:$0xff]  ;;  %vm102_vm0 = vcmask 261120   ;;  %v1494_v40 = vmov 0.0  }
   0xf   :  { %v91_v2 = vld [vmem:[%s1950_s1 + $0x78] sm:$0xff]  ;;  %1301 = vmatpush.msra.mxu1 %v88_v0  ;;  %221 = vmatpush.msra.mxu2 %v90_v1  ;;  %v84_v3 = vld [vmem:[%s1950_s1 + $0x40] sm:$0xff]  ;;  %v86_v4 = vld [vmem:[%s1950_s1 + $0x50] sm:$0xff]  ;;  %vm345_vm9 = vcmask 523264  }
  0x10   :  { %v87_v5 = vld [vmem:[%s1950_s1 + $0x58] sm:$0xff]  ;;  %262 = vmatpush.msra.mxu3 %v91_v2  ;;  %v80_v6 = vld [vmem:[%s1950_s1 + $0x20] sm:$0xff]  ;;  %v82_v7 = vld [vmem:[%s1950_s1 + $0x30] sm:$0xff]  ;;  %139 = vmatpush.msra.mxu0 %v88_v0 }
  0x11   :  { %1302 = vmatpush.msra.mxu1 %v84_v3  ;;  %222 = vmatpush.msra.mxu2 %v86_v4  ;;  %v83_v8 = vld [vmem:[%s1950_s1 + $0x38] sm:$0xff]  ;;  %v76_v9 = vld [vmem:[%s1950_s1] sm:$0xff]  ;;  %v78_v10 = vld [vmem:[%s1950_s1 + $0x10] sm:$0xff] }
  0x12   :  { %263 = vmatpush.msra.mxu3 %v87_v5  ;;  %140 = vmatpush.msra.mxu0 %v84_v3  ;;  %v79_v11 = vld [vmem:[%s1950_s1 + $0x18] sm:$0xff]  ;;  %v89_v13 = vld [vmem:[%s1950_s1 + $0x68] sm:$0xff]  ;;  %v68_v14 = vld [vmem:[%s1949_s0] sm:$0xff] }
  0x13   :  { %1303 = vmatpush.msra.mxu1 %v80_v6  ;;  %223 = vmatpush.msra.mxu2 %v82_v7  ;;  %v1579_v12 = vld [vmem:[%s1949_s0 + $0x38] sm:$0xff]  ;;  %v85_v15 = vld [vmem:[%s1950_s1 + $0x48] sm:$0xff]  ;;  %v70_v24 = vld [vmem:[%s1949_s0 + $0x10] sm:$0xff] }
  0x14   :  { %264 = vmatpush.msra.mxu3 %v83_v8  ;;  %141 = vmatpush.msra.mxu0 %v80_v6  ;;  %v81_v16 = vld [vmem:[%s1950_s1 + $0x28] sm:$0xff]  ;;  %v1597_v17 = vld [vmem:[#allocation3 + $0x78] sm:$0xff]  ;;  %v72_v28 = vld [vmem:[%s1949_s0 + $0x20] sm:$0xff] }
  0x15   :  { %1304 = vmatpush.msra.mxu1 %v76_v9  ;;  %224 = vmatpush.msra.mxu2 %v78_v10  ;;  %v77_v18 = vld [vmem:[%s1950_s1 + $0x8] sm:$0xff]  ;;  %v1610_v21 = vld [vmem:[#allocation3 + $0x58] sm:$0xff]  ;;  %v1670_v31 = vld [vmem:[#allocation3 + $0x70] sm:$0xff] }
  0x16   :  { %265 = vmatpush.msra.mxu3 %v79_v11  ;;  %1245 = vmatmul.msk.f32.vlgmr.msra.gmra.mxu1 %vm102_vm0, %v1579_v12  ;;  %v1604_v19 = vld [vmem:[#allocation3 + $0x68] sm:$0xff]  ;;  %v1623_v23 = vld [vmem:[#allocation3 + $0x38] sm:$0xff]  ;;  %v1675_v32 = vld [vmem:[#allocation3 + $0x60] sm:$0xff] }
  0x17   :  { %180 = vmatpush.msrb.mxu1 %v89_v13  ;;  %1254 = vmatmul.msk.f32.vlgmr.msra.gmra.mxu2 %vm102_vm0, %v68_v14  ;;  %v69_v20 = vld [vmem:[%s1949_s0 + $0x8] sm:$0xff]  ;;  %v71_v26 = vld [vmem:[%s1949_s0 + $0x18] sm:$0xff]  ;;  %v1680_v33 = vld [vmem:[#allocation3 + $0x50] sm:$0xff] }
  0x18   :  { %1262 = vmatmul.msk.f32.vlgmr.msra.gmra.mxu3 %vm102_vm0, %v68_v14  ;;  %142 = vmatpush.msra.mxu0 %v76_v9  ;;  %v1618_v22 = vld [vmem:[#allocation3 + $0x48] sm:$0xff]  ;;  %v1645_v27 = vld [vmem:[#allocation3 + $0x18] sm:$0xff]  ;;  %v1685_v34 = vld [vmem:[#allocation3 + $0x40] sm:$0xff] }
  0x19   :  { %181 = vmatpush.msrb.mxu1 %v85_v15  ;;  %1238 = vmatmul.msk.f32.vlgmr.msra.gmra.mxu0 %vm102_vm0, %v68_v14  ;;  %v1634_v25 = vld [vmem:[#allocation3 + $0x28] sm:$0xff]  ;;  %v74_v35 = vld [vmem:[%s1949_s0 + $0x30] sm:$0xff]  ;;  %v1701_v37 = vld [vmem:[#allocation3 + $0x20] sm:$0xff] }
  0x1a   :  { %484 = vmatpush.msrb.mxu3 %v1597_v17  ;;  %v1654_v29 = vld [vmem:[#allocation3 + $0x8] sm:$0xff]  ;;  %357 = vmatpush.msrb.mxu0 %v1670_v31  ;;  %v1694_v36 = vld [vmem:[#allocation3 + $0x30] sm:$0xff]  ;;  %v1712_v39 = vld [vmem:[#allocation3] sm:$0xff] }
  0x1b   :  { %182 = vmatpush.msrb.mxu1 %v81_v16  ;;  %v73_v30 = vld [vmem:[%s1949_s0 + $0x28] sm:$0xff]  ;;  %464 = vmatpush.msrb.mxu2 %v1670_v31  ;;  %v1707_v38 = vld [vmem:[#allocation3 + $0x10] sm:$0xff]  ;;  %v92_v41 = vld [vmem:[%s1951_s2] sm:$0xf]  ;;  %s1495_s2 = smov 64  }
  0x1c   :  { %485 = vmatpush.msrb.mxu3 %v1604_v19  ;;  %358 = vmatpush.msrb.mxu0 %v1675_v32  ;;  %v1765_v42 = vperm.slane %v92_v41, 0  ;;  %v1768_v45 = vperm.slane %v92_v41, 2  ;;  %v1770_v46 = vperm.slane %v92_v41, 3  ;;  %v95_v54 = vperm.slane %v92_v41, 1 }
  0x1d   :  { %183 = vmatpush.msrb.mxu1 %v77_v18  ;;  %465 = vmatpush.msrb.mxu2 %v1675_v32 }
  0x1e   :  { %1246 = vmatmul.msk.f32.vlgmr.msrb.gmra.mxu1 %vm102_vm0, %v68_v14  ;;  %486 = vmatpush.msrb.mxu3 %v1610_v21 }
  0x1f   :  { %377 = vmatpush.msra.mxu1 %v1597_v17  ;;  %1255 = vmatmul.msk.f32.gmra.mxu2 %vm102_vm0, %v69_v20 }
  0x20   :  { %1263 = vmatmul.msk.f32.gmra.mxu3 %vm102_vm0, %v69_v20  ;;  %359 = vmatpush.msrb.mxu0 %v1680_v33 }
  0x21   :  { %378 = vmatpush.msra.mxu1 %v1604_v19  ;;  %1239 = vmatmul.msk.f32.gmra.mxu0 %vm102_vm0, %v69_v20 }
  0x22   :  { %487 = vmatpush.msrb.mxu3 %v1618_v22  ;;  %466 = vmatpush.msrb.mxu2 %v1680_v33 }
  0x23   :  { %379 = vmatpush.msra.mxu1 %v1610_v21  ;;  %360 = vmatpush.msrb.mxu0 %v1685_v34 }
  0x24   :  { %488 = vmatpush.msrb.mxu3 %v1623_v23  ;;  %467 = vmatpush.msrb.mxu2 %v1685_v34 }
  0x25   :  { %380 = vmatpush.msra.mxu1 %v1618_v22  ;;  %361 = vmatpush.msrb.mxu0 %v1694_v36 }
  0x26   :  { %1247 = vmatmul.msk.f32.gmra.mxu1 %vm102_vm0, %v69_v20  ;;  %489 = vmatpush.msrb.mxu3 %v1634_v25 }
  0x27   :  { %381 = vmatpush.msra.mxu1 %v1623_v23  ;;  %1256 = vmatmul.msk.f32.gmra.mxu2 %vm102_vm0, %v70_v24 }
  0x28   :  { %1264 = vmatmul.msk.f32.gmra.mxu3 %vm102_vm0, %v70_v24  ;;  %362 = vmatpush.msrb.mxu0 %v1701_v37 }
  0x29   :  { %382 = vmatpush.msra.mxu1 %v1634_v25  ;;  %1240 = vmatmul.msk.f32.gmra.mxu0 %vm102_vm0, %v70_v24 }
  0x2a   :  { %490 = vmatpush.msrb.mxu3 %v1645_v27  ;;  %468 = vmatpush.msrb.mxu2 %v1694_v36 }
  0x2b   :  { %383 = vmatpush.msra.mxu1 %v1645_v27  ;;  %363 = vmatpush.msrb.mxu0 %v1707_v38 }
  0x2c   :  { %491 = vmatpush.msrb.mxu3 %v1654_v29  ;;  %469 = vmatpush.msrb.mxu2 %v1701_v37 }
  0x2d   :  { %384 = vmatpush.msra.mxu1 %v1654_v29  ;;  %364 = vmatpush.msrb.mxu0 %v1712_v39 }
  0x2e   :  { %1248 = vmatmul.msk.f32.gmra.mxu1 %vm102_vm0, %v70_v24  ;;  %698 = vmatpush.msra.mxu3 %v1597_v17 }
  0x2f   :  { %1257 = vmatmul.msk.f32.gmra.mxu2 %vm102_vm0, %v71_v26  ;;  %591 = vmatpush.msrb.mxu1 %v1597_v17 }
  0x30   :  { %1265 = vmatmul.msk.f32.gmra.mxu3 %vm102_vm0, %v71_v26  ;;  %571 = vmatpush.msra.mxu0 %v1670_v31 }
  0x31   :  { %1241 = vmatmul.msk.f32.gmra.mxu0 %vm102_vm0, %v71_v26  ;;  %592 = vmatpush.msrb.mxu1 %v1604_v19 }
  0x32   :  { %699 = vmatpush.msra.mxu3 %v1604_v19  ;;  %470 = vmatpush.msrb.mxu2 %v1707_v38 }
  0x33   :  { %593 = vmatpush.msrb.mxu1 %v1610_v21  ;;  %572 = vmatpush.msra.mxu0 %v1675_v32 }
  0x34   :  { %700 = vmatpush.msra.mxu3 %v1610_v21  ;;  %471 = vmatpush.msrb.mxu2 %v1712_v39 }
  0x35   :  { %594 = vmatpush.msrb.mxu1 %v1618_v22  ;;  %573 = vmatpush.msra.mxu0 %v1680_v33 }
  0x36   :  { %1249 = vmatmul.msk.f32.gmra.mxu1 %vm102_vm0, %v71_v26  ;;  %701 = vmatpush.msra.mxu3 %v1618_v22 }
  0x37   :  { %1258 = vmatmul.msk.f32.gmra.mxu2 %vm102_vm0, %v72_v28  ;;  %595 = vmatpush.msrb.mxu1 %v1623_v23 }
  0x38   :  { %1266 = vmatmul.msk.f32.gmra.mxu3 %vm102_vm0, %v72_v28  ;;  %678 = vmatpush.msra.mxu2 %v1670_v31 }
  0x39   :  { %1242 = vmatmul.msk.f32.gmra.mxu0 %vm102_vm0, %v72_v28  ;;  %596 = vmatpush.msrb.mxu1 %v1634_v25 }
  0x3a   :  { %702 = vmatpush.msra.mxu3 %v1623_v23  ;;  %679 = vmatpush.msra.mxu2 %v1675_v32 }
  0x3b   :  { %597 = vmatpush.msrb.mxu1 %v1645_v27  ;;  %574 = vmatpush.msra.mxu0 %v1685_v34 }
  0x3c   :  { %703 = vmatpush.msra.mxu3 %v1634_v25  ;;  %680 = vmatpush.msra.mxu2 %v1680_v33 }
  0x3d   :  { %598 = vmatpush.msrb.mxu1 %v1654_v29  ;;  %575 = vmatpush.msra.mxu0 %v1694_v36 }
  0x3e   :  { %1250 = vmatmul.msk.f32.gmra.mxu1 %vm102_vm0, %v72_v28  ;;  %704 = vmatpush.msra.mxu3 %v1645_v27 }
  0x3f   :  { %1259 = vmatmul.msk.f32.gmra.mxu2 %vm102_vm0, %v73_v30  ;;  %576 = vmatpush.msra.mxu0 %v1701_v37 }
  0x40   :  { %1267 = vmatmul.msk.f32.gmra.mxu3 %vm102_vm0, %v73_v30  ;;  %681 = vmatpush.msra.mxu2 %v1685_v34 }
  0x41   :  { %1243 = vmatmul.msk.f32.gmra.mxu0 %vm102_vm0, %v73_v30  ;;  %705 = vmatpush.msra.mxu3 %v1654_v29 }
  0x42   :  { %682 = vmatpush.msra.mxu2 %v1694_v36  ;;  %577 = vmatpush.msra.mxu0 %v1707_v38 }
  0x44   :  { %683 = vmatpush.msra.mxu2 %v1701_v37  ;;  %578 = vmatpush.msra.mxu0 %v1712_v39 }
  0x46   :  { %1251 = vmatmul.msk.f32.gmra.mxu1 %vm102_vm0, %v73_v30  ;;  %684 = vmatpush.msra.mxu2 %v1707_v38 }
  0x47   :  { %1260 = vmatmul.msk.f32.gmra.mxu2 %vm102_vm0, %v74_v35 }
  0x48   :  { %1268 = vmatmul.msk.f32.gmra.mxu3 %vm102_vm0, %v74_v35  ;;  %685 = vmatpush.msra.mxu2 %v1712_v39 }
  0x49   :  { %1244 = vmatmul.msk.f32.gmra.mxu0 %vm102_vm0, %v74_v35 }
  0x4e   :  { %1252 = vmatmul.msk.f32.gmra.mxu1 %vm102_vm0, %v74_v35 }
  0x4f   :  { %1261 = vmatmul.msk.f32.gmra.mxu2 %vm102_vm0, %v1579_v12 }
  0x50   :  { %1269 = vmatmul.msk.f32.gmra.mxu3 %vm102_vm0, %v1579_v12 }
  0x51   :  { %365 = vmatmul.f32.vlgmr.msrb.gmra.mxu0 %v1494_v40 }
  0x52   :  { %785 = vmatpush.msrb.mxu0 %v1670_v31 }
  0x54   :  { %786 = vmatpush.msrb.mxu0 %v1675_v32 }
  0x56   :  { %1253 = vmatmul.msk.f32.gmra.mxu1 %vm102_vm0, %v1579_v12  ;;  %787 = vmatpush.msrb.mxu0 %v1680_v33 }
  0x58   :  { %788 = vmatpush.msrb.mxu0 %v1685_v34 }
  0x5a   :  { %789 = vmatpush.msrb.mxu0 %v1694_v36 }
  0x5c   :  { %790 = vmatpush.msrb.mxu0 %v1701_v37 }
  0x5e   :  { %385 = vmatmul.f32.vlgmr.msra.gmra.mxu1 %v1494_v40  ;;  %791 = vmatpush.msrb.mxu0 %v1707_v38 }
  0x5f   :  { %805 = vmatpush.msra.mxu1 %v1597_v17 }
  0x60   :  { %792 = vmatpush.msrb.mxu0 %v1712_v39 }
  0x61   :  { %806 = vmatpush.msra.mxu1 %v1604_v19 }
  0x63   :  { %807 = vmatpush.msra.mxu1 %v1610_v21 }
  0x65   :  { %808 = vmatpush.msra.mxu1 %v1618_v22 }
  0x67   :  { %809 = vmatpush.msra.mxu1 %v1623_v23 }
  0x69   :  { %810 = vmatpush.msra.mxu1 %v1634_v25 }
  0x6b   :  { %811 = vmatpush.msra.mxu1 %v1645_v27 }
  0x6d   :  { %812 = vmatpush.msra.mxu1 %v1654_v29 }
  0x93   :  { %v165_v43 = vpop.f32.mrf.mxu1 }
  0x94   :  { %v166_v44 = vadd.f32 %v165_v43, %v1765_v42 }
  0x96   :  { %v1776_v52 = vpop.f32.mrf.mxu0 }
  0x9a   :  { %v226_v47 = vpop.f32.mrf.mxu2 }
  0x9b   :  { %v227_v48 = vadd.f32 %v226_v47, %v1768_v45  ;;  %v267_v49 = vpop.f32.mrf.mxu3  ;;  %v1773_v50 = vpop.f32.mrf.mxu1 }
  0x9c   :  { %v268_v51 = vadd.f32 %v267_v49, %v1770_v46 }
  0x9d   :  { %v1778_v53 = vadd.f32 %v227_v48, %v166_v44 }
  0x9e   :  { %v147_v60 = vpop.f32.mrf.mxu0 }
  0x9f   :  { %v148_v62 = vadd.f32 %v147_v60, %v1765_v42 }
  0xa2   :  { %v229_v59 = vpop.f32.mrf.mxu2 }
  0xa3   :  { %v270_v55 = vpop.f32.mrf.mxu3  ;;  %v188_v56 = vpop.f32.mrf.mxu1  ;;  %v230_v61 = vadd.f32 %v229_v59, %v1768_v45 }
  0xa4   :  { %v271_v57 = vadd.f32 %v270_v55, %v1770_v46  ;;  %v189_v58 = vadd.f32 %v188_v56, %v95_v54 }
  0xa6   :  { %v150_v4 = vpop.f32.mrf.mxu0 }
  0xa7   :  { %v151_v6 = vadd.f32 %v150_v4, %v1765_v42 }
  0xaa   :  { %v232_v3 = vpop.f32.mrf.mxu2 }
  0xab   :  { %v273_v63 = vpop.f32.mrf.mxu3  ;;  %v191_v0 = vpop.f32.mrf.mxu1  ;;  %v233_v5 = vadd.f32 %v232_v3, %v1768_v45 }
  0xac   :  { %v274_v1 = vadd.f32 %v273_v63, %v1770_v46  ;;  %v192_v2 = vadd.f32 %v191_v0, %v95_v54 }
  0xae   :  { %v153_v12 = vpop.f32.mrf.mxu0 }
  0xaf   :  { %v154_v14 = vadd.f32 %v153_v12, %v1765_v42 }
  0xb2   :  { %v235_v11 = vpop.f32.mrf.mxu2 }
  0xb3   :  { %v276_v7 = vpop.f32.mrf.mxu3  ;;  %v194_v8 = vpop.f32.mrf.mxu1  ;;  %v236_v13 = vadd.f32 %v235_v11, %v1768_v45 }
  0xb4   :  { %v277_v9 = vadd.f32 %v276_v7, %v1770_v46  ;;  %v195_v10 = vadd.f32 %v194_v8, %v95_v54 }
  0xb6   :  { %v156_v30 = vpop.f32.mrf.mxu0 }
  0xb7   :  { %v157_v55 = vadd.f32 %v156_v30, %v1765_v42 }
  0xba   :  { %v238_v24 = vpop.f32.mrf.mxu2 }
  0xbb   :  { %v279_v15 = vpop.f32.mrf.mxu3  ;;  %v197_v16 = vpop.f32.mrf.mxu1  ;;  %v239_v49 = vadd.f32 %v238_v24, %v1768_v45 }
  0xbc   :  { %v280_v18 = vadd.f32 %v279_v15, %v1770_v46  ;;  %v198_v20 = vadd.f32 %v197_v16, %v95_v54 }
  0xbe   :  { %v1790_v26 = vadd.f32 %v280_v18, %v195_v10  ;;  %v1792_v28 = vadd.f32 %v277_v9, %v198_v20  ;;  %v159_v59 = vpop.f32.mrf.mxu0  ;;  %v186_v20 = vadd.f32 %v1773_v50, %v95_v54 }
  0xbf   :  { %v160_v0 = vadd.f32 %v159_v59, %v1765_v42 }
  0xc2   :  { %v241_v44 = vpop.f32.mrf.mxu2 }
  0xc3   :  { %v282_v35 = vpop.f32.mrf.mxu3  ;;  %v200_v40 = vpop.f32.mrf.mxu1  ;;  %v242_v56 = vadd.f32 %v241_v44, %v1768_v45 }
  0xc4   :  { %v283_v41 = vadd.f32 %v282_v35, %v1770_v46  ;;  %v201_v43 = vadd.f32 %v200_v40, %v95_v54 }
  0xc6   :  { %v1795_v47 = vadd.f32 %v283_v41, %v192_v2  ;;  %v1797_v48 = vadd.f32 %v274_v1, %v201_v43  ;;  %v162_v9 = vpop.f32.mrf.mxu0  ;;  %v1819_v41 = vadd.f32 %v233_v5, %v160_v0  ;;  %v1821_v43 = vadd.f32 %v242_v56, %v151_v6 }
  0xc7   :  { %v163_v12 = vadd.f32 %v162_v9, %v1765_v42 }
  0xc9   :  { %v1815_v35 = vadd.f32 %v230_v61, %v163_v12 }
  0xca   :  { %v244_v7 = vpop.f32.mrf.mxu2 }
  0xcb   :  { %v285_v60 = vpop.f32.mrf.mxu3  ;;  %v203_v63 = vpop.f32.mrf.mxu1  ;;  %v245_v1 = vadd.f32 %v244_v7, %v1768_v45 }
  0xcc   :  { %v286_v3 = vadd.f32 %v285_v60, %v1770_v46  ;;  %v204_v4 = vadd.f32 %v203_v63, %v95_v54 }
  0xcd   :  { %v1817_v40 = vadd.f32 %v245_v1, %v148_v62 }
  0xce   :  { %v1804_v8 = vadd.f32 %v286_v3, %v189_v58  ;;  %v1806_v2 = vadd.f32 %v271_v57, %v204_v4  ;;  %v366_v60 = vpop.f32.mrf.mxu0 }
  0xd2   :  { %v247_v50 = vpop.f32.mrf.mxu2 }
  0xd3   :  { %v288_v10 = vpop.f32.mrf.mxu3  ;;  %v206_v11 = vpop.f32.mrf.mxu1  ;;  %v248_v44 = vadd.f32 %v247_v50, %v1768_v45 }
  0xd4   :  { %v207_v15 = vadd.f32 %v206_v11, %v95_v54  ;;  %v289_v16 = vadd.f32 %v288_v10, %v1770_v46  ;;  %v1823_v46 = vadd.f32 %v236_v13, %v157_v55  ;;  %v145_v54 = vadd.f32 %v1776_v52, %v1765_v42 }
  0xd6   :  { %v1811_v18 = vadd.f32 %v268_v51, %v207_v15  ;;  %v344_v24 = vadd.f32 %v289_v16, %v186_v20  ;;  %v1825_v51 = vadd.f32 %v239_v49, %v154_v14  ;;  %v343_v59 = vadd.f32 %v248_v44, %v145_v54 }
  0xd8   :  { %v389_v61 = vadd.f32 %v366_v60, %v343_v59 }
  0xda   :  { %v1270_v63 = vmul.f32 -1.442695, %v389_v61 }
  0xdb   :  { %v386_v30 = vpop.f32.mrf.mxu1 }
  0xdc   :  { %v390_v58 = vadd.f32 %v386_v30, %v344_v24 }
  0xde   :  { %1315 = vtanh.f32 %v390_v58  ;;  %v1271_v11 = vmul.f32 -1.442695, %v390_v58 }
  0xdf   :  { %1317 = vpow2.f32 %v1270_v63 }
  0xe4   :  { %v1316_v57 = vpop.eup %1315 }
  0xe5   :  { %432 = vrot.lane.b32.xlu0 %v1316_v57, %s1495_s2  ;;  %v1318_v62 = vpop.eup %1317 }
  0xe6   :  { %v397_v5 = vadd.f32 1.0, %v1318_v62 }
  0xe8   :  { %1319 = vrcp.f32 %v397_v5  ;;  %vm404_vm1 = vweird.f32 %v397_v5  ;;  %v410_v14 = vand.u32 2147483648, %v397_v5  ;;  %v408_v0 = vand.u32 2147483647, %v397_v5 }
  0xea   :  { %v411_v42 = vor.u32 1.1754944e-38, %v410_v14  ;;  %vm409_vm4 = vcmp.eq.f32.partialorder %v408_v0, 8.507059e+37 }
  0xee   :  { %v1320_v6 = vpop.eup %1319 }
  0xef   :  { %v400_v56 = vmul.f32 %v1320_v6, %v397_v5  ;;  %vm405_vm2 = vweird.f32 %v1320_v6 }
  0xf0   :  { %vm406_vm3 = vmor %vm404_vm1, %vm405_vm2 }
  0xf1   :  { %v401_v13 = vsub.f32 1.0, %v400_v56 }
  0xf3   :  { %v402_v55 = vmul.f32 %v1320_v6, %v401_v13 }
  0xf5   :  { %v403_v49 = vadd.f32 %v1320_v6, %v402_v55 }
  0xf7   :  { %v407_v45 = vsel %vm406_vm3, %v1320_v6, %v403_v49 }
  0xf8   :  { %v412_v3 = vsel %vm409_vm4, %v411_v42, %v407_v45 }
  0xf9   :  { %v430_v7 = vmul.f32 0.0, %v412_v3 }
 0x157   :  { %v433_v52 = vpop.permute.xlu0 %432 }
 0x158   :  { %v435_v4 = vmul.f32 %v433_v52, %v412_v3 }
 0x15a   :  { %437 = vrot.lane.b32.xlu0 %v435_v4, %s1495_s2 }
 0x1cc   :  { %v438_v1 = vpop.permute.xlu0 %437 }
 0x1cd   :  { %v1831_v9 = vadd.f32 %v438_v1, %v430_v7 }
 0x1cf   :  { %1321 = vtanh.f32 %v1831_v9 }
 0x1d0   :  { %1323 = vpow2.f32 %v1271_v11 }
 0x1d5   :  { %v1322_v10 = vpop.eup %1321 }
 0x1d6   :  { %443 = vrot.lane.b32.xlu1 %v1322_v10, %s1495_s2  ;;  %v1324_v12 = vpop.eup %1323 }
 0x1d7   :  { %v398_v15 = vadd.f32 1.0, %v1324_v12 }
 0x1d9   :  { %1325 = vrcp.f32 %v398_v15  ;;  %v425_v50 = vand.u32 2147483648, %v398_v15  ;;  %vm419_vm6 = vweird.f32 %v398_v15  ;;  %v423_v54 = vand.u32 2147483647, %v398_v15 }
 0x1db   :  { %v426_v59 = vor.u32 1.1754944e-38, %v425_v50  ;;  %vm424_vm8 = vcmp.eq.f32.partialorder %v423_v54, 8.507059e+37 }
 0x1df   :  { %v1326_v16 = vpop.eup %1325 }
 0x1e0   :  { %v415_v20 = vmul.f32 %v1326_v16, %v398_v15  ;;  %vm420_vm5 = vweird.f32 %v1326_v16 }
 0x1e1   :  { %vm421_vm7 = vmor %vm419_vm6, %vm420_vm5 }
 0x1e2   :  { %v416_v24 = vsub.f32 1.0, %v415_v20 }
 0x1e4   :  { %v417_v30 = vmul.f32 %v1326_v16, %v416_v24 }
 0x1e6   :  { %v418_v57 = vadd.f32 %v1326_v16, %v417_v30 }
 0x1e8   :  { %v422_v44 = vsel %vm421_vm7, %v1326_v16, %v418_v57 }
 0x1e9   :  { %v427_v60 = vsel %vm424_vm8, %v426_v59, %v422_v44 }
 0x248   :  { %v444_v61 = vpop.permute.xlu1 %443 }
 0x249   :  { %v446_v58 = vmul.f32 %v444_v61, %v427_v60 }
 0x24b   :  { %1272 = vmatmul.msk.f32.vlgmr.msrb.gmra.mxu2 %vm345_vm9, %v446_v58  ;;  %1273 = vmatmul.msk.f32.vlgmr.msrb.gmra.mxu3 %vm345_vm9, %v446_v58 }
 0x24c   :  { %892 = vmatpush.msrb.mxu2 %v1670_v31  ;;  %912 = vmatpush.msrb.mxu3 %v1597_v17 }
 0x24e   :  { %893 = vmatpush.msrb.mxu2 %v1675_v32  ;;  %913 = vmatpush.msrb.mxu3 %v1604_v19 }
 0x250   :  { %894 = vmatpush.msrb.mxu2 %v1680_v33  ;;  %914 = vmatpush.msrb.mxu3 %v1610_v21 }
 0x252   :  { %895 = vmatpush.msrb.mxu2 %v1685_v34  ;;  %915 = vmatpush.msrb.mxu3 %v1618_v22 }
 0x254   :  { %896 = vmatpush.msrb.mxu2 %v1694_v36  ;;  %916 = vmatpush.msrb.mxu3 %v1623_v23 }
 0x256   :  { %897 = vmatpush.msrb.mxu2 %v1701_v37  ;;  %917 = vmatpush.msrb.mxu3 %v1634_v25 }
 0x258   :  { %898 = vmatpush.msrb.mxu2 %v1707_v38  ;;  %918 = vmatpush.msrb.mxu3 %v1645_v27 }
 0x25a   :  { %899 = vmatpush.msrb.mxu2 %v1712_v39  ;;  %919 = vmatpush.msrb.mxu3 %v1654_v29 }
 0x2ce   :  { %v493_v63 = vpop.f32.mrf.mxu3  ;;  %v473_v6 = vpop.f32.mrf.mxu2 }
 0x2cf   :  { %v497_v62 = vadd.f32 %v493_v63, %v1804_v8  ;;  %v496_v56 = vadd.f32 %v473_v6, %v1817_v40 }
 0x2d1   :  { %1327 = vtanh.f32 %v497_v62  ;;  %v1274_v13 = vmul.f32 -1.442695, %v496_v56  ;;  %v1275_v20 = vmul.f32 -1.442695, %v497_v62 }
 0x2d3   :  { %1329 = vpow2.f32 %v1274_v13 }
 0x2d7   :  { %v1328_v5 = vpop.eup %1327 }
 0x2d8   :  { %539 = vrot.lane.b32.xlu1 %v1328_v5, %s1495_s2 }
 0x2d9   :  { %v1330_v55 = vpop.eup %1329 }
 0x2da   :  { %v504_v14 = vadd.f32 1.0, %v1330_v55 }
 0x2dc   :  { %1331 = vrcp.f32 %v504_v14  ;;  %v517_v3 = vand.u32 2147483648, %v504_v14  ;;  %vm511_vm11 = vweird.f32 %v504_v14  ;;  %v515_v8 = vand.u32 2147483647, %v504_v14 }
 0x2de   :  { %v518_v7 = vor.u32 1.1754944e-38, %v517_v3  ;;  %vm516_vm13 = vcmp.eq.f32.partialorder %v515_v8, 8.507059e+37 }
 0x2e2   :  { %v1332_v49 = vpop.eup %1331 }
 0x2e3   :  { %v507_v0 = vmul.f32 %v1332_v49, %v504_v14  ;;  %vm512_vm10 = vweird.f32 %v1332_v49 }
 0x2e4   :  { %vm513_vm12 = vmor %vm511_vm11, %vm512_vm10 }
 0x2e5   :  { %v508_v42 = vsub.f32 1.0, %v507_v0 }
 0x2e7   :  { %v509_v45 = vmul.f32 %v1332_v49, %v508_v42 }
 0x2e9   :  { %v510_v52 = vadd.f32 %v1332_v49, %v509_v45 }
 0x2eb   :  { %v514_v4 = vsel %vm513_vm12, %v1332_v49, %v510_v52 }
 0x2ec   :  { %v519_v40 = vsel %vm516_vm13, %v518_v7, %v514_v4 }
 0x2ed   :  { %v537_v11 = vmul.f32 %v519_v40, %v1831_v9 }
 0x34a   :  { %v540_v1 = vpop.permute.xlu1 %539 }
 0x34b   :  { %v542_v10 = vmul.f32 %v540_v1, %v519_v40 }
 0x34d   :  { %544 = vrot.lane.b32.xlu2 %v542_v10, %s1495_s2 }
 0x3a7   :  { %v545_v12 = vpop.permute.xlu2 %544 }
 0x3a8   :  { %v1858_v15 = vadd.f32 %v545_v12, %v537_v11 }
 0x3aa   :  { %1333 = vtanh.f32 %v1858_v15 }
 0x3ab   :  { %1335 = vpow2.f32 %v1275_v20 }
 0x3b0   :  { %v1334_v16 = vpop.eup %1333 }
 0x3b1   :  { %550 = vrot.lane.b32.xlu2 %v1334_v16, %s1495_s2  ;;  %v1336_v24 = vpop.eup %1335 }
 0x3b2   :  { %v505_v30 = vadd.f32 1.0, %v1336_v24 }
 0x3b4   :  { %1337 = vrcp.f32 %v505_v30  ;;  %v532_v9 = vand.u32 2147483648, %v505_v30  ;;  %vm526_vm15 = vweird.f32 %v505_v30  ;;  %v530_v60 = vand.u32 2147483647, %v505_v30 }
 0x3b6   :  { %v533_v58 = vor.u32 1.1754944e-38, %v532_v9  ;;  %vm531_vm1 = vcmp.eq.f32.partialorder %v530_v60, 8.507059e+37 }
 0x3ba   :  { %v1338_v57 = vpop.eup %1337 }
 0x3bb   :  { %v522_v50 = vmul.f32 %v1338_v57, %v505_v30  ;;  %vm527_vm14 = vweird.f32 %v1338_v57 }
 0x3bc   :  { %vm528_vm0 = vmor %vm526_vm15, %vm527_vm14 }
 0x3bd   :  { %v523_v54 = vsub.f32 1.0, %v522_v50 }
 0x3bf   :  { %v524_v44 = vmul.f32 %v1338_v57, %v523_v54 }
 0x3c1   :  { %v525_v59 = vadd.f32 %v1338_v57, %v524_v44 }
 0x3c3   :  { %v529_v61 = vsel %vm528_vm0, %v1338_v57, %v525_v59 }
 0x3c4   :  { %v534_v63 = vsel %vm531_vm1, %v533_v58, %v529_v61 }
 0x40b   :  { %v551_v5 = vpop.permute.xlu2 %550 }
 0x40c   :  { %v553_v62 = vmul.f32 %v551_v5, %v534_v63 }
 0x40e   :  { %1276 = vmatmul.msk.f32.vlgmr.msra.gmra.mxu0 %vm345_vm9, %v553_v62  ;;  %1277 = vmatmul.msk.f32.vlgmr.msrb.gmra.mxu1 %vm345_vm9, %v553_v62 }
 0x40f   :  { %999 = vmatpush.msra.mxu0 %v1670_v31  ;;  %1019 = vmatpush.msrb.mxu1 %v1597_v17 }
 0x411   :  { %1000 = vmatpush.msra.mxu0 %v1675_v32  ;;  %1020 = vmatpush.msrb.mxu1 %v1604_v19 }
 0x413   :  { %1001 = vmatpush.msra.mxu0 %v1680_v33  ;;  %1021 = vmatpush.msrb.mxu1 %v1610_v21 }
 0x415   :  { %1002 = vmatpush.msra.mxu0 %v1685_v34  ;;  %1022 = vmatpush.msrb.mxu1 %v1618_v22 }
 0x417   :  { %1003 = vmatpush.msra.mxu0 %v1694_v36  ;;  %1023 = vmatpush.msrb.mxu1 %v1623_v23 }
 0x419   :  { %1004 = vmatpush.msra.mxu0 %v1701_v37  ;;  %1024 = vmatpush.msrb.mxu1 %v1634_v25 }
 0x41b   :  { %1005 = vmatpush.msra.mxu0 %v1707_v38  ;;  %1025 = vmatpush.msrb.mxu1 %v1645_v27 }
 0x41d   :  { %1006 = vmatpush.msra.mxu0 %v1712_v39  ;;  %1026 = vmatpush.msrb.mxu1 %v1654_v29 }
 0x48b   :  { %v600_v6 = vpop.f32.mrf.mxu1  ;;  %v580_v55 = vpop.f32.mrf.mxu0 }
 0x48c   :  { %v604_v56 = vadd.f32 %v600_v6, %v1795_v47  ;;  %v603_v14 = vadd.f32 %v580_v55, %v1821_v43 }
 0x48e   :  { %1339 = vtanh.f32 %v604_v56  ;;  %v1278_v49 = vmul.f32 -1.442695, %v603_v14  ;;  %v1279_v30 = vmul.f32 -1.442695, %v604_v56 }
 0x490   :  { %1341 = vpow2.f32 %v1278_v49 }
 0x494   :  { %v1340_v13 = vpop.eup %1339 }
 0x495   :  { %646 = vrot.lane.b32.xlu0 %v1340_v13, %s1495_s2 }
 0x496   :  { %v1342_v0 = vpop.eup %1341 }
 0x497   :  { %v611_v42 = vadd.f32 1.0, %v1342_v0 }
 0x499   :  { %1343 = vrcp.f32 %v611_v42  ;;  %v624_v7 = vand.u32 2147483648, %v611_v42  ;;  %vm618_vm3 = vweird.f32 %v611_v42  ;;  %v622_v47 = vand.u32 2147483647, %v611_v42 }
 0x49b   :  { %v625_v40 = vor.u32 1.1754944e-38, %v624_v7  ;;  %vm623_vm5 = vcmp.eq.f32.partialorder %v622_v47, 8.507059e+37 }
 0x49f   :  { %v1344_v45 = vpop.eup %1343 }
 0x4a0   :  { %v614_v52 = vmul.f32 %v1344_v45, %v611_v42  ;;  %vm619_vm2 = vweird.f32 %v1344_v45 }
 0x4a1   :  { %vm620_vm4 = vmor %vm618_vm3, %vm619_vm2 }
 0x4a2   :  { %v615_v3 = vsub.f32 1.0, %v614_v52 }
 0x4a4   :  { %v616_v8 = vmul.f32 %v1344_v45, %v615_v3 }
 0x4a6   :  { %v617_v4 = vadd.f32 %v1344_v45, %v616_v8 }
 0x4a8   :  { %v621_v1 = vsel %vm620_vm4, %v1344_v45, %v617_v4 }
 0x4a9   :  { %v626_v43 = vsel %vm623_vm5, %v625_v40, %v621_v1 }
 0x4aa   :  { %v644_v12 = vmul.f32 %v626_v43, %v1858_v15 }
 0x507   :  { %v647_v10 = vpop.permute.xlu0 %646 }
 0x508   :  { %v649_v11 = vmul.f32 %v647_v10, %v626_v43 }
 0x50a   :  { %651 = vrot.lane.b32.xlu1 %v649_v11, %s1495_s2 }
 0x57c   :  { %v652_v16 = vpop.permute.xlu1 %651 }
 0x57d   :  { %v1885_v20 = vadd.f32 %v652_v16, %v644_v12 }
 0x57f   :  { %1345 = vtanh.f32 %v1885_v20 }
 0x580   :  { %1347 = vpow2.f32 %v1279_v30 }
 0x585   :  { %v1346_v24 = vpop.eup %1345 }
 0x586   :  { %657 = vrot.lane.b32.xlu2 %v1346_v24, %s1495_s2  ;;  %v1348_v57 = vpop.eup %1347 }
 0x587   :  { %v612_v50 = vadd.f32 1.0, %v1348_v57 }
 0x589   :  { %1349 = vrcp.f32 %v612_v50  ;;  %v639_v15 = vand.u32 2147483648, %v612_v50  ;;  %vm633_vm7 = vweird.f32 %v612_v50  ;;  %v637_v61 = vand.u32 2147483647, %v612_v50 }
 0x58b   :  { %v640_v63 = vor.u32 1.1754944e-38, %v639_v15  ;;  %vm638_vm10 = vcmp.eq.f32.partialorder %v637_v61, 8.507059e+37 }
 0x58f   :  { %v1350_v54 = vpop.eup %1349 }
 0x590   :  { %v629_v44 = vmul.f32 %v1350_v54, %v612_v50  ;;  %vm634_vm6 = vweird.f32 %v1350_v54 }
 0x591   :  { %vm635_vm8 = vmor %vm633_vm7, %vm634_vm6 }
 0x592   :  { %v630_v59 = vsub.f32 1.0, %v629_v44 }
 0x594   :  { %v631_v9 = vmul.f32 %v1350_v54, %v630_v59 }
 0x596   :  { %v632_v60 = vadd.f32 %v1350_v54, %v631_v9 }
 0x598   :  { %v636_v58 = vsel %vm635_vm8, %v1350_v54, %v632_v60 }
 0x599   :  { %v641_v5 = vsel %vm638_vm10, %v640_v63, %v636_v58 }
 0x5e0   :  { %v658_v62 = vpop.permute.xlu2 %657 }
 0x5e1   :  { %v660_v6 = vmul.f32 %v658_v62, %v641_v5 }
 0x5e3   :  { %1280 = vmatmul.msk.f32.vlgmr.msra.gmra.mxu2 %vm345_vm9, %v660_v6  ;;  %1281 = vmatmul.msk.f32.vlgmr.msra.gmra.mxu3 %vm345_vm9, %v660_v6 }
 0x5e4   :  { %1106 = vmatpush.msra.mxu2 %v1670_v31  ;;  %1126 = vmatpush.msra.mxu3 %v1597_v17 }
 0x5e6   :  { %1107 = vmatpush.msra.mxu2 %v1675_v32  ;;  %1127 = vmatpush.msra.mxu3 %v1604_v19 }
 0x5e8   :  { %1108 = vmatpush.msra.mxu2 %v1680_v33  ;;  %1128 = vmatpush.msra.mxu3 %v1610_v21 }
 0x5ea   :  { %1109 = vmatpush.msra.mxu2 %v1685_v34  ;;  %1129 = vmatpush.msra.mxu3 %v1618_v22 }
 0x5ec   :  { %1110 = vmatpush.msra.mxu2 %v1694_v36  ;;  %1130 = vmatpush.msra.mxu3 %v1623_v23 }
 0x5ee   :  { %1111 = vmatpush.msra.mxu2 %v1701_v37  ;;  %1131 = vmatpush.msra.mxu3 %v1634_v25 }
 0x5f0   :  { %1112 = vmatpush.msra.mxu2 %v1707_v38  ;;  %1132 = vmatpush.msra.mxu3 %v1645_v27 }
 0x5f2   :  { %1113 = vmatpush.msra.mxu2 %v1712_v39  ;;  %1133 = vmatpush.msra.mxu3 %v1654_v29 }
 0x666   :  { %v707_v17 = vpop.f32.mrf.mxu3  ;;  %v687_v22 = vpop.f32.mrf.mxu2 }
 0x667   :  { %v711_v19 = vadd.f32 %v707_v17, %v1790_v26  ;;  %v710_v23 = vadd.f32 %v687_v22, %v1825_v51 }
 0x669   :  { %1351 = vtanh.f32 %v711_v19  ;;  %v1282_v31 = vmul.f32 -1.442695, %v710_v23  ;;  %v1283_v42 = vmul.f32 -1.442695, %v711_v19 }
 0x66b   :  { %1353 = vpow2.f32 %v1282_v31 }
 0x66f   :  { %v1352_v21 = vpop.eup %1351 }
 0x670   :  { %753 = vrot.lane.b32.xlu0 %v1352_v21, %s1495_s2 }
 0x671   :  { %v1354_v25 = vpop.eup %1353 }
 0x672   :  { %v718_v32 = vadd.f32 1.0, %v1354_v25 }
 0x674   :  { %1355 = vrcp.f32 %v718_v32  ;;  %v731_v37 = vand.u32 2147483648, %v718_v32  ;;  %vm725_vm12 = vweird.f32 %v718_v32  ;;  %v729_v38 = vand.u32 2147483647, %v718_v32 }
 0x676   :  { %v732_v26 = vor.u32 1.1754944e-38, %v731_v37  ;;  %vm730_vm14 = vcmp.eq.f32.partialorder %v729_v38, 8.507059e+37 }
 0x67a   :  { %v1356_v27 = vpop.eup %1355 }
 0x67b   :  { %v721_v33 = vmul.f32 %v1356_v27, %v718_v32  ;;  %vm726_vm11 = vweird.f32 %v1356_v27 }
 0x67c   :  { %vm727_vm13 = vmor %vm725_vm12, %vm726_vm11 }
 0x67d   :  { %v722_v34 = vsub.f32 1.0, %v721_v33 }
 0x67f   :  { %v723_v36 = vmul.f32 %v1356_v27, %v722_v34 }
 0x681   :  { %v724_v29 = vadd.f32 %v1356_v27, %v723_v36 }
 0x683   :  { %v728_v39 = vsel %vm727_vm13, %v1356_v27, %v724_v29 }
 0x684   :  { %v733_v51 = vsel %vm730_vm14, %v732_v26, %v728_v39 }
 0x685   :  { %v751_v55 = vmul.f32 %v733_v51, %v1885_v20 }
 0x6e2   :  { %v754_v56 = vpop.permute.xlu0 %753 }
 0x6e3   :  { %v756_v13 = vmul.f32 %v754_v56, %v733_v51 }
 0x6e5   :  { %758 = vrot.lane.b32.xlu1 %v756_v13, %s1495_s2 }
 0x757   :  { %v759_v14 = vpop.permute.xlu1 %758 }
 0x758   :  { %v761_v49 = vadd.f32 %v759_v14, %v751_v55 }
 0x75a   :  { %1357 = vtanh.f32 %v761_v49 }
 0x75b   :  { %1359 = vpow2.f32 %v1283_v42 }
 0x760   :  { %v1358_v0 = vpop.eup %1357 }
 0x761   :  { %764 = vrot.lane.b32.xlu2 %v1358_v0, %s1495_s2  ;;  %v1360_v45 = vpop.eup %1359 }
 0x762   :  { %v719_v52 = vadd.f32 1.0, %v1360_v45 }
 0x764   :  { %1361 = vrcp.f32 %v719_v52  ;;  %v746_v1 = vand.u32 2147483648, %v719_v52  ;;  %vm740_vm0 = vweird.f32 %v719_v52  ;;  %v744_v40 = vand.u32 2147483647, %v719_v52 }
 0x766   :  { %v747_v43 = vor.u32 1.1754944e-38, %v746_v1  ;;  %vm745_vm2 = vcmp.eq.f32.partialorder %v744_v40, 8.507059e+37 }
 0x76a   :  { %v1362_v3 = vpop.eup %1361 }
 0x76b   :  { %v736_v8 = vmul.f32 %v1362_v3, %v719_v52  ;;  %vm741_vm15 = vweird.f32 %v1362_v3 }
 0x76c   :  { %vm742_vm1 = vmor %vm740_vm0, %vm741_vm15 }
 0x76d   :  { %v737_v4 = vsub.f32 1.0, %v736_v8 }
 0x76f   :  { %v738_v7 = vmul.f32 %v1362_v3, %v737_v4 }
 0x771   :  { %v739_v47 = vadd.f32 %v1362_v3, %v738_v7 }
 0x773   :  { %v743_v10 = vsel %vm742_vm1, %v1362_v3, %v739_v47 }
 0x774   :  { %v748_v11 = vsel %vm745_vm2, %v747_v43, %v743_v10 }
 0x7bb   :  { %v765_v12 = vpop.permute.xlu2 %764 }
 0x7bc   :  { %v767_v16 = vmul.f32 %v765_v12, %v748_v11 }
 0x7be   :  { %1284 = vmatmul.msk.f32.vlgmr.msrb.gmra.mxu0 %vm345_vm9, %v767_v16  ;;  %1285 = vmatmul.msk.f32.vlgmr.msra.gmra.mxu1 %vm345_vm9, %v767_v16 }
 0x83b   :  { %v814_v20 = vpop.f32.mrf.mxu1  ;;  %v794_v57 = vpop.f32.mrf.mxu0 }
 0x83c   :  { %v818_v24 = vadd.f32 %v814_v20, %v1792_v28  ;;  %v817_v50 = vadd.f32 %v794_v57, %v1823_v46 }
 0x83e   :  { %1363 = vtanh.f32 %v818_v24  ;;  %v1286_v54 = vmul.f32 -1.442695, %v817_v50  ;;  %v1287_v31 = vmul.f32 -1.442695, %v818_v24 }
 0x840   :  { %1365 = vpow2.f32 %v1286_v54 }
 0x844   :  { %v1364_v30 = vpop.eup %1363 }
 0x845   :  { %860 = vrot.lane.b32.xlu0 %v1364_v30, %s1495_s2 }
 0x846   :  { %v1366_v44 = vpop.eup %1365 }
 0x847   :  { %v825_v59 = vadd.f32 1.0, %v1366_v44 }
 0x849   :  { %1367 = vrcp.f32 %v825_v59  ;;  %v838_v63 = vand.u32 2147483648, %v825_v59  ;;  %vm832_vm4 = vweird.f32 %v825_v59  ;;  %v836_v28 = vand.u32 2147483647, %v825_v59 }
 0x84b   :  { %v839_v62 = vor.u32 1.1754944e-38, %v838_v63  ;;  %vm837_vm6 = vcmp.eq.f32.partialorder %v836_v28, 8.507059e+37 }
 0x84f   :  { %v1368_v9 = vpop.eup %1367 }
 0x850   :  { %v828_v60 = vmul.f32 %v1368_v9, %v825_v59  ;;  %vm833_vm3 = vweird.f32 %v1368_v9 }
 0x851   :  { %vm834_vm5 = vmor %vm832_vm4, %vm833_vm3 }
 0x852   :  { %v829_v15 = vsub.f32 1.0, %v828_v60 }
 0x854   :  { %v830_v61 = vmul.f32 %v1368_v9, %v829_v15 }
 0x856   :  { %v831_v58 = vadd.f32 %v1368_v9, %v830_v61 }
 0x858   :  { %v835_v5 = vsel %vm834_vm5, %v1368_v9, %v831_v58 }
 0x859   :  { %v840_v46 = vsel %vm837_vm6, %v839_v62, %v835_v5 }
 0x85a   :  { %v858_v19 = vmul.f32 %v840_v46, %v761_v49 }
 0x8b7   :  { %v861_v6 = vpop.permute.xlu0 %860 }
 0x8b8   :  { %v863_v17 = vmul.f32 %v861_v6, %v840_v46 }
 0x8ba   :  { %865 = vrot.lane.b32.xlu1 %v863_v17, %s1495_s2 }
 0x92c   :  { %v866_v21 = vpop.permute.xlu1 %865 }
 0x92d   :  { %v868_v22 = vadd.f32 %v866_v21, %v858_v19 }
 0x92f   :  { %1369 = vtanh.f32 %v868_v22 }
 0x930   :  { %1371 = vpow2.f32 %v1287_v31 }
 0x935   :  { %v1370_v23 = vpop.eup %1369 }
 0x936   :  { %871 = vrot.lane.b32.xlu2 %v1370_v23, %s1495_s2  ;;  %v1372_v25 = vpop.eup %1371 }
 0x937   :  { %v826_v32 = vadd.f32 1.0, %v1372_v25 }
 0x939   :  { %1373 = vrcp.f32 %v826_v32  ;;  %v853_v37 = vand.u32 2147483648, %v826_v32  ;;  %vm847_vm8 = vweird.f32 %v826_v32  ;;  %v851_v38 = vand.u32 2147483647, %v826_v32 }
 0x93b   :  { %v854_v26 = vor.u32 1.1754944e-38, %v853_v37  ;;  %vm852_vm11 = vcmp.eq.f32.partialorder %v851_v38, 8.507059e+37 }
 0x93f   :  { %v1374_v27 = vpop.eup %1373 }
 0x940   :  { %v843_v33 = vmul.f32 %v1374_v27, %v826_v32  ;;  %vm848_vm7 = vweird.f32 %v1374_v27 }
 0x941   :  { %vm849_vm10 = vmor %vm847_vm8, %vm848_vm7 }
 0x942   :  { %v844_v34 = vsub.f32 1.0, %v843_v33 }
 0x944   :  { %v845_v36 = vmul.f32 %v1374_v27, %v844_v34 }
 0x946   :  { %v846_v29 = vadd.f32 %v1374_v27, %v845_v36 }
 0x948   :  { %v850_v39 = vsel %vm849_vm10, %v1374_v27, %v846_v29 }
 0x949   :  { %v855_v56 = vsel %vm852_vm11, %v854_v26, %v850_v39 }
 0x990   :  { %v872_v51 = vpop.permute.xlu2 %871 }
 0x991   :  { %v874_v13 = vmul.f32 %v872_v51, %v855_v56 }
 0x993   :  { %1288 = vmatmul.msk.f32.vlgmr.msrb.gmra.mxu2 %vm345_vm9, %v874_v13  ;;  %1289 = vmatmul.msk.f32.vlgmr.msrb.gmra.mxu3 %vm345_vm9, %v874_v13 }
 0xa16   :  { %v921_v55 = vpop.f32.mrf.mxu3  ;;  %v901_v0 = vpop.f32.mrf.mxu2 }
 0xa17   :  { %v925_v14 = vadd.f32 %v921_v55, %v1797_v48  ;;  %v924_v42 = vadd.f32 %v901_v0, %v1819_v41 }
 0xa19   :  { %1375 = vtanh.f32 %v925_v14  ;;  %v1290_v45 = vmul.f32 -1.442695, %v924_v42  ;;  %v1291_v57 = vmul.f32 -1.442695, %v925_v14 }
 0xa1b   :  { %1377 = vpow2.f32 %v1290_v45 }
 0xa1f   :  { %v1376_v49 = vpop.eup %1375 }
 0xa20   :  { %967 = vrot.lane.b32.xlu0 %v1376_v49, %s1495_s2 }
 0xa21   :  { %v1378_v52 = vpop.eup %1377 }
 0xa22   :  { %v932_v3 = vadd.f32 1.0, %v1378_v52 }
 0xa24   :  { %1379 = vrcp.f32 %v932_v3  ;;  %v945_v40 = vand.u32 2147483648, %v932_v3  ;;  %vm939_vm13 = vweird.f32 %v932_v3  ;;  %v943_v48 = vand.u32 2147483647, %v932_v3 }
 0xa26   :  { %v946_v43 = vor.u32 1.1754944e-38, %v945_v40  ;;  %vm944_vm15 = vcmp.eq.f32.partialorder %v943_v48, 8.507059e+37 }
 0xa2a   :  { %v1380_v8 = vpop.eup %1379 }
 0xa2b   :  { %v935_v4 = vmul.f32 %v1380_v8, %v932_v3  ;;  %vm940_vm12 = vweird.f32 %v1380_v8 }
 0xa2c   :  { %vm941_vm14 = vmor %vm939_vm13, %vm940_vm12 }
 0xa2d   :  { %v936_v7 = vsub.f32 1.0, %v935_v4 }
 0xa2f   :  { %v937_v47 = vmul.f32 %v1380_v8, %v936_v7 }
 0xa31   :  { %v938_v1 = vadd.f32 %v1380_v8, %v937_v47 }
 0xa33   :  { %v942_v10 = vsel %vm941_vm14, %v1380_v8, %v938_v1 }
 0xa34   :  { %v947_v41 = vsel %vm944_vm15, %v946_v43, %v942_v10 }
 0xa35   :  { %v965_v16 = vmul.f32 %v947_v41, %v868_v22 }
 0xa92   :  { %v968_v11 = vpop.permute.xlu0 %967 }
 0xa93   :  { %v970_v12 = vmul.f32 %v968_v11, %v947_v41 }
 0xa95   :  { %972 = vrot.lane.b32.xlu1 %v970_v12, %s1495_s2 }
 0xb07   :  { %v973_v20 = vpop.permute.xlu1 %972 }
 0xb08   :  { %v975_v24 = vadd.f32 %v973_v20, %v965_v16 }
 0xb0a   :  { %1381 = vtanh.f32 %v975_v24 }
 0xb0b   :  { %1383 = vpow2.f32 %v1291_v57 }
 0xb10   :  { %v1382_v30 = vpop.eup %1381 }
 0xb11   :  { %978 = vrot.lane.b32.xlu2 %v1382_v30, %s1495_s2  ;;  %v1384_v50 = vpop.eup %1383 }
 0xb12   :  { %v933_v54 = vadd.f32 1.0, %v1384_v50 }
 0xb14   :  { %1385 = vrcp.f32 %v933_v54  ;;  %v960_v61 = vand.u32 2147483648, %v933_v54  ;;  %vm954_vm1 = vweird.f32 %v933_v54  ;;  %v958_v58 = vand.u32 2147483647, %v933_v54 }
 0xb16   :  { %v961_v28 = vor.u32 1.1754944e-38, %v960_v61  ;;  %vm959_vm3 = vcmp.eq.f32.partialorder %v958_v58, 8.507059e+37 }
 0xb1a   :  { %v1386_v44 = vpop.eup %1385 }
 0xb1b   :  { %v950_v59 = vmul.f32 %v1386_v44, %v933_v54  ;;  %vm955_vm0 = vweird.f32 %v1386_v44 }
 0xb1c   :  { %vm956_vm2 = vmor %vm954_vm1, %vm955_vm0 }
 0xb1d   :  { %v951_v9 = vsub.f32 1.0, %v950_v59 }
 0xb1f   :  { %v952_v60 = vmul.f32 %v1386_v44, %v951_v9 }
 0xb21   :  { %v953_v15 = vadd.f32 %v1386_v44, %v952_v60 }
 0xb23   :  { %v957_v63 = vsel %vm956_vm2, %v1386_v44, %v953_v15 }
 0xb24   :  { %v962_v5 = vsel %vm959_vm3, %v961_v28, %v957_v63  ;;  %v1203_v63 = vld [vmem:[#allocation5 + $0x38] sm:$0xff]  ;;  %v1202_v28 = vld [vmem:[#allocation5 + $0x30] sm:$0xff] }
 0xb25   :  { %1219 = vmatpush.msrb.mxu0 %v1203_v63 }
 0xb27   :  { %1220 = vmatpush.msrb.mxu0 %v1202_v28 }
 0xb6b   :  { %v979_v62 = vpop.permute.xlu2 %978 }
 0xb6c   :  { %v981_v6 = vmul.f32 %v979_v62, %v962_v5  ;;  %v1201_v5 = vld [vmem:[#allocation5 + $0x28] sm:$0xff]  ;;  %v1200_v62 = vld [vmem:[#allocation5 + $0x20] sm:$0xff] }
 0xb6d   :  { %1221 = vmatpush.msrb.mxu0 %v1201_v5 }
 0xb6e   :  { %1292 = vmatmul.msk.f32.vlgmr.msra.gmra.mxu0 %vm345_vm9, %v981_v6  ;;  %1293 = vmatmul.msk.f32.vlgmr.msrb.gmra.mxu1 %vm345_vm9, %v981_v6  ;;  %v1199_v6 = vld [vmem:[#allocation5 + $0x18] sm:$0xff] }
 0xb6f   :  { %1222 = vmatpush.msrb.mxu0 %v1200_v62 }
 0xb71   :  { %1223 = vmatpush.msrb.mxu0 %v1199_v6 }
 0xbeb   :  { %v1028_v46 = vpop.f32.mrf.mxu1  ;;  %v1008_v21 = vpop.f32.mrf.mxu0 }
 0xbec   :  { %v1032_v17 = vadd.f32 %v1028_v46, %v1806_v2  ;;  %v1031_v22 = vadd.f32 %v1008_v21, %v1815_v35  ;;  %v1198_v46 = vld [vmem:[#allocation5 + $0x10] sm:$0xff] }
 0xbed   :  { %1224 = vmatpush.msrb.mxu0 %v1198_v46 }
 0xbee   :  { %1387 = vtanh.f32 %v1032_v17  ;;  %v1294_v23 = vmul.f32 -1.442695, %v1031_v22  ;;  %v1295_v14 = vmul.f32 -1.442695, %v1032_v17  ;;  %v1197_v17 = vld [vmem:[#allocation5 + $0x8] sm:$0xff] }
 0xbef   :  { %1225 = vmatpush.msrb.mxu0 %v1197_v17 }
 0xbf0   :  { %1389 = vpow2.f32 %v1294_v23 }
 0xbf4   :  { %v1388_v19 = vpop.eup %1387 }
 0xbf5   :  { %1074 = vrot.lane.b32.xlu0 %v1388_v19, %s1495_s2 }
 0xbf6   :  { %v1390_v31 = vpop.eup %1389 }
 0xbf7   :  { %v1039_v25 = vadd.f32 1.0, %v1390_v31 }
 0xbf9   :  { %1391 = vrcp.f32 %v1039_v25  ;;  %v1052_v29 = vand.u32 2147483648, %v1039_v25  ;;  %vm1046_vm5 = vweird.f32 %v1039_v25  ;;  %v1050_v2 = vand.u32 2147483647, %v1039_v25 }
 0xbfb   :  { %v1053_v38 = vor.u32 1.1754944e-38, %v1052_v29  ;;  %vm1051_vm7 = vcmp.eq.f32.partialorder %v1050_v2, 8.507059e+37 }
 0xbff   :  { %v1392_v32 = vpop.eup %1391 }
 0xc00   :  { %v1042_v27 = vmul.f32 %v1392_v32, %v1039_v25  ;;  %vm1047_vm4 = vweird.f32 %v1392_v32 }
 0xc01   :  { %vm1048_vm6 = vmor %vm1046_vm5, %vm1047_vm4 }
 0xc02   :  { %v1043_v33 = vsub.f32 1.0, %v1042_v27  ;;  %v1196_v27 = vld [vmem:[#allocation5] sm:$0xff] }
 0xc03   :  { %1226 = vmatpush.msrb.mxu0 %v1196_v27 }
 0xc04   :  { %v1044_v34 = vmul.f32 %v1392_v32, %v1043_v33 }
 0xc06   :  { %v1045_v36 = vadd.f32 %v1392_v32, %v1044_v34 }
 0xc08   :  { %v1049_v37 = vsel %vm1048_vm6, %v1392_v32, %v1045_v36 }
 0xc09   :  { %v1054_v35 = vsel %vm1051_vm7, %v1053_v38, %v1049_v37 }
 0xc0a   :  { %v1072_v56 = vmul.f32 %v1054_v35, %v975_v24 }
 0xc67   :  { %v1075_v39 = vpop.permute.xlu0 %1074 }
 0xc68   :  { %v1077_v26 = vmul.f32 %v1075_v39, %v1054_v35 }
 0xc6a   :  { %1079 = vrot.lane.b32.xlu1 %v1077_v26, %s1495_s2 }
 0xcdc   :  { %v1080_v51 = vpop.permute.xlu1 %1079 }
 0xcdd   :  { %v1933_v13 = vadd.f32 %v1080_v51, %v1072_v56 }
 0xcdf   :  { %1393 = vtanh.f32 %v1933_v13 }
 0xce0   :  { %1395 = vpow2.f32 %v1295_v14 }
 0xce5   :  { %v1394_v55 = vpop.eup %1393 }
 0xce6   :  { %1085 = vrot.lane.b32.xlu2 %v1394_v55, %s1495_s2  ;;  %v1396_v49 = vpop.eup %1395 }
 0xce7   :  { %v1040_v0 = vadd.f32 1.0, %v1396_v49 }
 0xce9   :  { %1397 = vrcp.f32 %v1040_v0  ;;  %v1067_v4 = vand.u32 2147483648, %v1040_v0  ;;  %vm1061_vm10 = vweird.f32 %v1040_v0  ;;  %v1065_v7 = vand.u32 2147483647, %v1040_v0 }
 0xceb   :  { %v1068_v1 = vor.u32 1.1754944e-38, %v1067_v4  ;;  %vm1066_vm12 = vcmp.eq.f32.partialorder %v1065_v7, 8.507059e+37 }
 0xcef   :  { %v1398_v42 = vpop.eup %1397 }
 0xcf0   :  { %v1057_v45 = vmul.f32 %v1398_v42, %v1040_v0  ;;  %vm1062_vm8 = vweird.f32 %v1398_v42 }
 0xcf1   :  { %vm1063_vm11 = vmor %vm1061_vm10, %vm1062_vm8 }
 0xcf2   :  { %v1058_v52 = vsub.f32 1.0, %v1057_v45 }
 0xcf4   :  { %v1059_v3 = vmul.f32 %v1398_v42, %v1058_v52 }
 0xcf6   :  { %v1060_v8 = vadd.f32 %v1398_v42, %v1059_v3 }
 0xcf8   :  { %v1064_v47 = vsel %vm1063_vm11, %v1398_v42, %v1060_v8 }
 0xcf9   :  { %v1069_v40 = vsel %vm1066_vm12, %v1068_v1, %v1064_v47 }
 0xd40   :  { %v1086_v48 = vpop.permute.xlu2 %1085 }
 0xd41   :  { %v1088_v10 = vmul.f32 %v1086_v48, %v1069_v40 }
 0xd43   :  { %1296 = vmatmul.msk.f32.vlgmr.msra.gmra.mxu2 %vm345_vm9, %v1088_v10  ;;  %1297 = vmatmul.msk.f32.vlgmr.msra.gmra.mxu3 %vm345_vm9, %v1088_v10 }
 0xdc6   :  { %v1135_v43 = vpop.f32.mrf.mxu3  ;;  %v1115_v12 = vpop.f32.mrf.mxu2 }
 0xdc7   :  { %v1139_v11 = vadd.f32 %v1135_v43, %v1811_v18  ;;  %v1138_v16 = vadd.f32 %v1115_v12, %v1778_v53 }
 0xdc9   :  { %1399 = vtanh.f32 %v1139_v11  ;;  %v1298_v20 = vmul.f32 -1.442695, %v1138_v16  ;;  %v1299_v31 = vmul.f32 -1.442695, %v1139_v11 }
 0xdcb   :  { %1401 = vpow2.f32 %v1298_v20 }
 0xdcf   :  { %v1400_v41 = vpop.eup %1399 }
 0xdd0   :  { %1181 = vrot.lane.b32.xlu0 %v1400_v41, %s1495_s2 }
 0xdd1   :  { %v1402_v24 = vpop.eup %1401 }
 0xdd2   :  { %v1146_v30 = vadd.f32 1.0, %v1402_v24 }
 0xdd4   :  { %1403 = vrcp.f32 %v1146_v30  ;;  %v1159_v9 = vand.u32 2147483648, %v1146_v30  ;;  %vm1153_vm14 = vweird.f32 %v1146_v30  ;;  %v1157_v18 = vand.u32 2147483647, %v1146_v30 }
 0xdd6   :  { %v1160_v15 = vor.u32 1.1754944e-38, %v1159_v9  ;;  %vm1158_vm0 = vcmp.eq.f32.partialorder %v1157_v18, 8.507059e+37 }
 0xdda   :  { %v1404_v57 = vpop.eup %1403 }
 0xddb   :  { %v1149_v50 = vmul.f32 %v1404_v57, %v1146_v30  ;;  %vm1154_vm13 = vweird.f32 %v1404_v57 }
 0xddc   :  { %vm1155_vm15 = vmor %vm1153_vm14, %vm1154_vm13 }
 0xddd   :  { %v1150_v54 = vsub.f32 1.0, %v1149_v50 }
 0xddf   :  { %v1151_v44 = vmul.f32 %v1404_v57, %v1150_v54 }
 0xde1   :  { %v1152_v59 = vadd.f32 %v1404_v57, %v1151_v44 }
 0xde3   :  { %v1156_v60 = vsel %vm1155_vm15, %v1404_v57, %v1152_v59 }
 0xde4   :  { %v1161_v53 = vsel %vm1158_vm0, %v1160_v15, %v1156_v60 }
 0xde5   :  { %v1179_v19 = vmul.f32 %v1161_v53, %v1933_v13  ;;  %v1314_v13 = vld [vmem:[#allocation7] ss:$0 sm:$0xff] }
 0xe42   :  { %v1182_v61 = vpop.permute.xlu0 %1181 }
 0xe43   :  { %v1184_v58 = vmul.f32 %v1182_v61, %v1161_v53 }
 0xe45   :  { %1186 = vrot.lane.b32.xlu1 %v1184_v58, %s1495_s2 }
 0xeb7   :  { %v1187_v21 = vpop.permute.xlu1 %1186 }
 0xeb8   :  { %v1189_v22 = vadd.f32 %v1187_v21, %v1179_v19 }
 0xeba   :  { %1405 = vtanh.f32 %v1189_v22 }
 0xebb   :  { %1407 = vpow2.f32 %v1299_v31 }
 0xec0   :  { %v1406_v23 = vpop.eup %1405 }
 0xec1   :  { %1192 = vrot.lane.b32.xlu2 %v1406_v23, %s1495_s2  ;;  %v1408_v25 = vpop.eup %1407 }
 0xec2   :  { %v1147_v32 = vadd.f32 1.0, %v1408_v25 }
 0xec4   :  { %1409 = vrcp.f32 %v1147_v32  ;;  %v1174_v37 = vand.u32 2147483648, %v1147_v32  ;;  %vm1168_vm2 = vweird.f32 %v1147_v32  ;;  %v1172_v38 = vand.u32 2147483647, %v1147_v32 }
 0xec6   :  { %v1175_v35 = vor.u32 1.1754944e-38, %v1174_v37  ;;  %vm1173_vm4 = vcmp.eq.f32.partialorder %v1172_v38, 8.507059e+37 }
 0xeca   :  { %v1410_v33 = vpop.eup %1409 }
 0xecb   :  { %v1164_v34 = vmul.f32 %v1410_v33, %v1147_v32  ;;  %vm1169_vm1 = vweird.f32 %v1410_v33 }
 0xecc   :  { %vm1170_vm3 = vmor %vm1168_vm2, %vm1169_vm1 }
 0xecd   :  { %v1165_v36 = vsub.f32 1.0, %v1164_v34 }
 0xecf   :  { %v1166_v29 = vmul.f32 %v1410_v33, %v1165_v36 }
 0xed1   :  { %v1167_v2 = vadd.f32 %v1410_v33, %v1166_v29 }
 0xed3   :  { %v1171_v39 = vsel %vm1170_vm3, %v1410_v33, %v1167_v2 }
 0xed4   :  { %v1176_v26 = vsel %vm1173_vm4, %v1175_v35, %v1171_v39 }
 0xf1b   :  { %v1193_v56 = vpop.permute.xlu2 %1192 }
 0xf1c   :  { %v1195_v51 = vmul.f32 %v1193_v56, %v1176_v26 }
 0xf1e   :  { %1300 = vmatmul.msk.f32.vlgmr.msrb.gmra.mxu0 %vm345_vm9, %v1195_v51 }
 0xf9b   :  { %v1228_v55 = vpop.f32.mrf.mxu0 }
 0xf9c   :  { %v1229_v14 = vadd.f32 %v1314_v13, %v1228_v55 }
 0xf9e   :  { %1231 = vst [vmem:[%s1955_s6] sm:$0xff] %v1229_v14 }
 0xf9f   :  { %1236 = vsyncpa [#allocation4], 1 }
 0xfa0   :  { %1237 = vsyncpa [#allocation6], 1 }

</bundles_post_ra>
